<compile_context>
chip_gen: v5e
topology: v5e:2x2
jax: 0.10.0
libtpu: 0.0.40
codegen_flags: <defaults>
</compile_context>

<pallas_src>
import jax
import jax.numpy as jnp
from jax.experimental import pallas as pl
from jax.experimental.pallas import tpu as pltpu


def _round_up(x, m):
    return (x + m - 1) // m * m


def generator_kernel(x_ref, w_ref, b_ref, o_ref, logits_ref, m_ref, l_ref):
    """One (row_block, vocab_block) grid step of fused linear + log_softmax."""
    j = pl.program_id(1)
    nj = pl.num_programs(1)
    tv = w_ref.shape[1]

    @pl.when(j == 0)
    def _():
        m_ref[...] = jnp.full(m_ref.shape, -jnp.inf, m_ref.dtype)
        l_ref[...] = jnp.zeros(l_ref.shape, l_ref.dtype)

    # MXU matmul for this (row_block, vocab_tile); accumulate in f32.
    logits = jnp.dot(x_ref[...], w_ref[...],
                     preferred_element_type=jnp.float32) + b_ref[...]

    # Stash raw f32 logits for this vocab tile (lane-aligned dynamic store).
    col = pl.multiple_of(j * tv, 128)
    logits_ref[:, pl.ds(col, tv)] = logits

    # Online logsumexp: running max + rescaled running sum-of-exp.
    tile_max = jnp.max(logits, axis=-1, keepdims=True)
    m_new = jnp.maximum(m_ref[...], tile_max)
    l_ref[...] = (l_ref[...] * jnp.exp(m_ref[...] - m_new)
                  + jnp.sum(jnp.exp(logits - m_new), axis=-1, keepdims=True))
    m_ref[...] = m_new

    # Finalize on the last vocab step: log_softmax = logits - (m + log(l)).
    @pl.when(j == nj - 1)
    def _():
        lse = m_ref[...] + jnp.log(l_ref[...])
        o_ref[...] = (logits_ref[...] - lse).astype(o_ref.dtype)


def generator_forward(x, w, b, *, tile_rows=256, vocab_tile=512, out_dtype=None):
    """x: (batch, seq, d_model), w: (d_model, vocab), b: (vocab,)."""
    batch, seq, d_model = x.shape
    assert w.shape[0] == d_model
    vocab = w.shape[1]
    out_dtype = out_dtype or x.dtype

    n = batch * seq
    x2 = x.reshape(n, d_model)
    b2 = b.astype(jnp.float32)

    # Row tile: multiple of 8 (f32) / 16 (bf16); clamp to the (padded) problem.
    row_mult = 16 if x.dtype == jnp.bfloat16 else 8
    tm = _round_up(min(tile_rows, _round_up(n, row_mult)), row_mult)
    n_pad = _round_up(n, tm)

    # Vocab tile: lane-dense multiple of 128.
    tv = _round_up(min(vocab_tile, _round_up(vocab, 128)), 128)
    vocab_pad = _round_up(vocab, tv)

    if n_pad != n:
        x2 = jnp.pad(x2, ((0, n_pad - n), (0, 0)))
    if vocab_pad != vocab:
        w = jnp.pad(w, ((0, 0), (0, vocab_pad - vocab)))
        # Very negative bias on padded vocab columns -> they contribute ~0 to
        # the logsumexp of real columns.
        b2 = jnp.pad(b2, ((0, vocab_pad - vocab),), constant_values=-1e30)
    b2 = b2.reshape(1, vocab_pad)

    grid = (n_pad // tm, vocab_pad // tv)

    # Explicit VMEM budget (instead of the 32 MiB scoped default), capped for
    # v7x's 64 MiB physical VMEM.
    x_isz = jnp.dtype(x.dtype).itemsize
    w_isz = jnp.dtype(w.dtype).itemsize
    o_isz = jnp.dtype(out_dtype).itemsize
    vmem_bytes = (2 * tm * d_model * x_isz          # x tile (double-buffered)
                  + 2 * d_model * tv * w_isz        # streamed W tile
                  + 2 * tv * 4                      # bias tile
                  + 2 * tm * vocab_pad * o_isz      # resident output block
                  + tm * vocab_pad * 4              # f32 logits scratch
                  + 4 * tm * 4)                     # m, l scratch
    vmem_limit = int(min(max(vmem_bytes * 3 // 2, 32 * 1024 * 1024),
                         64 * 1024 * 1024))

    out = pl.pallas_call(
        generator_kernel,
        out_shape=jax.ShapeDtypeStruct((n_pad, vocab_pad), out_dtype),
        grid_spec=pltpu.PrefetchScalarGridSpec(
            num_scalar_prefetch=0,
            grid=grid,
            in_specs=[
                pl.BlockSpec((tm, d_model), lambda i, j: (i, 0)),
                pl.BlockSpec((d_model, tv), lambda i, j: (0, j)),
                pl.BlockSpec((1, tv), lambda i, j: (0, j)),
            ],
            out_specs=pl.BlockSpec((tm, vocab_pad), lambda i, j: (i, 0)),
            scratch_shapes=[
                pltpu.VMEM((tm, vocab_pad), jnp.float32),  # raw logits
                pltpu.VMEM((tm, 1), jnp.float32),          # running max
                pltpu.VMEM((tm, 1), jnp.float32),          # running sum
            ],
        ),
        compiler_params=pltpu.CompilerParams(
            dimension_semantics=("parallel", "arbitrary"),
            vmem_limit_bytes=vmem_limit,
        ),
    )(x2, w, b2)

    return out[:n, :vocab].reshape(batch, seq, vocab)


if __name__ == "__main__":
    batch, seq, d_model, vocab = 2, 128, 128, 512

    key = jax.random.PRNGKey(0)
    kx, kw, kb = jax.random.split(key, 3)

    # Deterministic init mirroring nn.Linear's uniform(-1/sqrt(d), 1/sqrt(d)).
    bound = 1.0 / (d_model ** 0.5)
    w = jax.random.uniform(kw, (d_model, vocab), jnp.float32, -bound, bound)
    b = jax.random.uniform(kb, (vocab,), jnp.float32, -bound, bound)
    x = jax.random.normal(kx, (batch, seq, d_model), jnp.float32)

    # Smaller-than-default tiles here purely to exercise multi-step row and
    # vocab grid axes at demo shapes; production should use the defaults
    # (tile_rows>=256, vocab_tile 512-2048, bf16 x/W with f32 accumulation).
    out = generator_forward(x, w, b, tile_rows=128, vocab_tile=256)
    out = jax.block_until_ready(out)

    # Reference check in plain JAX.
    ref = jax.nn.log_softmax(x @ w + b, axis=-1)
    assert out.shape == (batch, seq, vocab)
    assert jnp.allclose(out, ref, atol=1e-4, rtol=1e-4), float(
        jnp.max(jnp.abs(out - ref)))

    # TODO(synk): optionally fuse the downstream NLL gather so the full
    # (N, vocab) log-prob tensor is never written back to HBM.
    print("KERNEL_OK")
</pallas_src>

<mosaic_0001>
module attributes {stable_mosaic.version = 11 : i64} {
  func.func @generator_kernel(%arg0: i32, %arg1: i32, %arg2: memref<128x128xf32, #tpu.memory_space<vmem>>, %arg3: memref<128x256xf32, #tpu.memory_space<vmem>>, %arg4: memref<1x256xf32, #tpu.memory_space<vmem>>, %arg5: memref<128x512xf32, #tpu.memory_space<vmem>>, %arg6: memref<128x512xf32, #tpu.memory_space<vmem>>, %arg7: memref<128x1xf32, #tpu.memory_space<vmem>>, %arg8: memref<128x1xf32, #tpu.memory_space<vmem>>) attributes {dimension_semantics = [#tpu.dimension_semantics<parallel>, #tpu.dimension_semantics<arbitrary>], iteration_bounds = array<i64: 2, 2>, scalar_prefetch = 0 : i64, scratch_operands = 3 : i64, tpu.core_type = #tpu.core_type<tc>, window_params = [{transform_indices = @transform_0, window_bounds = array<i64: 128, 128>}, {transform_indices = @transform_1, window_bounds = array<i64: 128, 256>}, {transform_indices = @transform_2, window_bounds = array<i64: 1, 256>}, {transform_indices = @transform_3, window_bounds = array<i64: 128, 512>}]} {
    %c0_i32 = arith.constant 0 : i32
    %0 = arith.cmpi eq, %arg1, %c0_i32 : i32
    %1 = arith.extui %0 : i1 to i32
    %c0_i32_0 = arith.constant 0 : i32
    %2 = arith.cmpi ne, %1, %c0_i32_0 : i32
    scf.if %2 {
      %cst_20 = arith.constant 0xFF800000 : f32
      %33 = vector.broadcast %cst_20 : f32 to vector<128x1xf32>
      %c0_21 = arith.constant 0 : index
      %c0_22 = arith.constant 0 : index
      %34 = vector.load %arg7[%c0_21, %c0_22] : memref<128x1xf32, #tpu.memory_space<vmem>>, vector<128x1xf32>
      tpu.vector_store %arg7[%c0_21, %c0_22], %33 {strides = array<i32>} : memref<128x1xf32, #tpu.memory_space<vmem>>, vector<128x1xf32>,
      %cst_23 = arith.constant 0.000000e+00 : f32
      %35 = vector.broadcast %cst_23 : f32 to vector<128x1xf32>
      %c0_24 = arith.constant 0 : index
      %c0_25 = arith.constant 0 : index
      %36 = vector.load %arg8[%c0_24, %c0_25] : memref<128x1xf32, #tpu.memory_space<vmem>>, vector<128x1xf32>
      tpu.vector_store %arg8[%c0_24, %c0_25], %35 {strides = array<i32>} : memref<128x1xf32, #tpu.memory_space<vmem>>, vector<128x1xf32>,
    } else {
    }
    %c0 = arith.constant 0 : index
    %c0_1 = arith.constant 0 : index
    %3 = vector.load %arg2[%c0, %c0_1] : memref<128x128xf32, #tpu.memory_space<vmem>>, vector<128x128xf32>
    %c0_2 = arith.constant 0 : index
    %c0_3 = arith.constant 0 : index
    %4 = vector.load %arg3[%c0_2, %c0_3] : memref<128x256xf32, #tpu.memory_space<vmem>>, vector<128x256xf32>
    %cst = arith.constant dense<0.000000e+00> : vector<128x256xf32>
    %5 = tpu.matmul %3, %4, %cst {dimension_numbers = #tpu.dot_dimension_numbers<[1], [0], [0], [1], [0, 0, 1, 1], [], []>} : vector<128x128xf32>, vector<128x256xf32>, vector<128x256xf32> -> vector<128x256xf32>
    %c0_4 = arith.constant 0 : index
    %c0_5 = arith.constant 0 : index
    %6 = vector.load %arg4[%c0_4, %c0_5] : memref<1x256xf32, #tpu.memory_space<vmem>>, vector<1x256xf32>
    %7 = vector.broadcast %6 : vector<1x256xf32> to vector<128x256xf32>
    %8 = arith.addf %5, %7 : vector<128x256xf32>
    %c256_i32 = arith.constant 256 : i32
    %9 = arith.muli %arg1, %c256_i32 : i32
    %10 = tpu.assume_multiple %9, 128 : i32
    %c0_6 = arith.constant 0 : index
    %11 = arith.index_cast %10 : i32 to index
    %12 = vector.load %arg6[%c0_6, %11] : memref<128x512xf32, #tpu.memory_space<vmem>>, vector<128x256xf32>
    tpu.vector_store %arg6[%c0_6, %11], %8 {strides = array<i32>} : memref<128x512xf32, #tpu.memory_space<vmem>>, vector<128x256xf32>,
    %cst_7 = arith.constant dense<0xFF800000> : vector<128xf32>
    %13 = vector.multi_reduction <maximumf>, %8, %cst_7 [1] : vector<128x256xf32> to vector<128xf32>
    %14 = vector.shape_cast %13 : vector<128xf32> to vector<128x1xf32>
    %c0_8 = arith.constant 0 : index
    %c0_9 = arith.constant 0 : index
    %15 = vector.load %arg7[%c0_8, %c0_9] : memref<128x1xf32, #tpu.memory_space<vmem>>, vector<128x1xf32>
    %16 = arith.maximumf %15, %14 : vector<128x1xf32>
    %c0_10 = arith.constant 0 : index
    %c0_11 = arith.constant 0 : index
    %17 = vector.load %arg8[%c0_10, %c0_11] : memref<128x1xf32, #tpu.memory_space<vmem>>, vector<128x1xf32>
    %c0_12 = arith.constant 0 : index
    %c0_13 = arith.constant 0 : index
    %18 = vector.load %arg7[%c0_12, %c0_13] : memref<128x1xf32, #tpu.memory_space<vmem>>, vector<128x1xf32>
    %19 = arith.subf %18, %16 : vector<128x1xf32>
    %20 = math.exp %19 : vector<128x1xf32>
    %21 = arith.mulf %17, %20 : vector<128x1xf32>
    %22 = vector.broadcast %16 : vector<128x1xf32> to vector<128x256xf32>
    %23 = arith.subf %8, %22 : vector<128x256xf32>
    %24 = math.exp %23 : vector<128x256xf32>
    %cst_14 = arith.constant dense<0.000000e+00> : vector<128xf32>
    %25 = vector.multi_reduction <add>, %24, %cst_14 [1] : vector<128x256xf32> to vector<128xf32>
    %26 = vector.shape_cast %25 : vector<128xf32> to vector<128x1xf32>
    %27 = arith.addf %21, %26 : vector<128x1xf32>
    %c0_15 = arith.constant 0 : index
    %c0_16 = arith.constant 0 : index
    %28 = vector.load %arg8[%c0_15, %c0_16] : memref<128x1xf32, #tpu.memory_space<vmem>>, vector<128x1xf32>
    tpu.vector_store %arg8[%c0_15, %c0_16], %27 {strides = array<i32>} : memref<128x1xf32, #tpu.memory_space<vmem>>, vector<128x1xf32>,
    %c0_17 = arith.constant 0 : index
    %c0_18 = arith.constant 0 : index
    %29 = vector.load %arg7[%c0_17, %c0_18] : memref<128x1xf32, #tpu.memory_space<vmem>>, vector<128x1xf32>
    tpu.vector_store %arg7[%c0_17, %c0_18], %16 {strides = array<i32>} : memref<128x1xf32, #tpu.memory_space<vmem>>, vector<128x1xf32>,
    %c1_i32 = arith.constant 1 : i32
    %30 = arith.cmpi eq, %arg1, %c1_i32 : i32
    %31 = arith.extui %30 : i1 to i32
    %c0_i32_19 = arith.constant 0 : i32
    %32 = arith.cmpi ne, %31, %c0_i32_19 : i32
    scf.if %32 {
      %c0_20 = arith.constant 0 : index
      %c0_21 = arith.constant 0 : index
      %33 = vector.load %arg7[%c0_20, %c0_21] : memref<128x1xf32, #tpu.memory_space<vmem>>, vector<128x1xf32>
      %c0_22 = arith.constant 0 : index
      %c0_23 = arith.constant 0 : index
      %34 = vector.load %arg8[%c0_22, %c0_23] : memref<128x1xf32, #tpu.memory_space<vmem>>, vector<128x1xf32>
      %35 = math.log %34 : vector<128x1xf32>
      %36 = arith.addf %33, %35 : vector<128x1xf32>
      %c0_24 = arith.constant 0 : index
      %c0_25 = arith.constant 0 : index
      %37 = vector.load %arg6[%c0_24, %c0_25] : memref<128x512xf32, #tpu.memory_space<vmem>>, vector<128x512xf32>
      %38 = vector.broadcast %36 : vector<128x1xf32> to vector<128x512xf32>
      %39 = arith.subf %37, %38 : vector<128x512xf32>
      %c0_26 = arith.constant 0 : index
      %c0_27 = arith.constant 0 : index
      %40 = vector.load %arg5[%c0_26, %c0_27] : memref<128x512xf32, #tpu.memory_space<vmem>>, vector<128x512xf32>
      tpu.vector_store %arg5[%c0_26, %c0_27], %39 {strides = array<i32>} : memref<128x512xf32, #tpu.memory_space<vmem>>, vector<128x512xf32>,
    } else {
    }
    return
  }
  func.func @transform_0(%arg0: i32, %arg1: i32) -> (i32, i32) {
    %c0_i32 = arith.constant 0 : i32
    %c0_i32_0 = arith.constant 0 : i32
    return %arg0, %c0_i32 : i32, i32
  }
  func.func @transform_1(%arg0: i32, %arg1: i32) -> (i32, i32) {
    %c0_i32 = arith.constant 0 : i32
    %c0_i32_0 = arith.constant 0 : i32
    return %c0_i32, %arg1 : i32, i32
  }
  func.func @transform_2(%arg0: i32, %arg1: i32) -> (i32, i32) {
    %c0_i32 = arith.constant 0 : i32
    %c0_i32_0 = arith.constant 0 : i32
    return %c0_i32, %arg1 : i32, i32
  }
  func.func @transform_3(%arg0: i32, %arg1: i32) -> (i32, i32) {
    %c0_i32 = arith.constant 0 : i32
    %c0_i32_0 = arith.constant 0 : i32
    return %arg0, %c0_i32 : i32, i32
  }
}

</mosaic_0001>

<bundles_post_ra>
// kernel: tpu_custom_call.1
= control target key start
LH: loop header
LB: loop body
LE: loop exit
PB: predicated region body
PF: predicated region fallthrough
CT: control target
= control target key end

     0   :  { %s2914_s0 = inlined_call_operand.hbm [shape: f32[256,128], index: 0, kind: input, shape index: {}]   ;;  %s2915_s1 = inlined_call_operand.hbm [shape: f32[128,512], index: 1, kind: input, shape index: {}]   ;;  %s2916_s2 = inlined_call_operand.hbm [shape: f32[1,512], index: 2, kind: input, shape index: {}]   ;;  %s2917_s3 = inlined_call_operand.hbm [shape: f32[256,512], index: 3, kind: output, shape index: {}]  }
   0x1   :  { %2942 = sst [smem:[#allocation39_spill]] %s2915_s1 }
   0x2   :  { %2943 = sst [smem:[#allocation40_spill]] %s2917_s3 }
   0x3   :  { %8 = vsyncpa [#allocation6], 0 }
   0x4   :  { %10 = vsyncpa [#allocation6 + $0x1], 0 }
   0x5   :  { %11 = vsyncpa [#allocation9], 0 }
   0x6   :  { %13 = vsyncpa [#allocation9 + $0x1], 0 }
   0x7   :  { %14 = vsyncpa [#allocation7], 0 }
   0x8   :  { %16 = vsyncpa [#allocation7 + $0x1], 0  ;;  %s2047_s12 = smov 0   ;;  %s2049_s13 = smov 0  }
   0x9   :  { %s2051_s14 = smov 0   ;;  %s2053_s15 = smov 0  }
   0xa   :  { %s2055_s16 = smov 0   ;;  %s2057_s17 = smov 0  }
   0xb   :  { %s2059_s18 = smov 0   ;;  %s2061_s19 = smov 0  }
   0xc   :  { %s2063_s20 = smov 0   ;;  %s2065_s21 = smov 0  }
   0xd   :  { %s2067_s22 = smov 0  }
   0xe LB: > { %2944 = sst [smem:[#allocation15_spill]] %s1986_s15  ;;  %s31_s23 = sadd.s32 1, %s2006_s20  ;;  %s2014_s22 = sphi %s2067_s22, %s22_s22   ;;  %s2010_s21 = sphi %s2065_s21, %s3019_s21   ;;  %s2006_s20 = sphi %s2063_s20, %s3026_s20   ;;  %s2002_s19 = sphi %s2061_s19, %s3017_s19   ;;  %s1998_s18 = sphi %s2059_s18, %s3025_s18   ;;  %s1994_s17 = sphi %s2057_s17, %s3016_s17   ;;  %s1990_s16 = sphi %s2055_s16, %s3024_s16   ;;  %s1986_s15 = sphi %s2053_s15, %s3023_s15   ;;  %s1982_s14 = sphi %s2051_s14, %s3022_s14   ;;  %s1978_s13 = sphi %s2049_s13, %s3021_s13   ;;  %s1974_s12 = sphi %s2047_s12, %s3020_s12  }
   0xf   : > { %2945 = sst [smem:[#allocation16_spill]] %s1994_s17  ;;  %p49_p0 = scmp.eq.s32.totalorder %s2014_s22, 0 }
  0x10   : > { %2946 = sst [smem:[#allocation17_spill]] %s2002_s19  ;;  %p2104_p1 = scmp.ge.s32.totalorder %s31_s23, 2 }
  0x11   : > { %2947 = sst [smem:[#allocation18_spill]] %s2010_s21  ;;  %s67_s25 = sadd.s32 1, %s1982_s14 }
  0x12   : > { %p74_p2 = scmp.ne.s32.totalorder %s1982_s14, %s1978_s13  ;;  %p80_p3 = scmp.ne.s32.totalorder %s1978_s13, %s1974_s12 }
  0x13   : > { %s3028_s23 = smov (%p2104_p1, %s31_s23), 0  ;;  %p1563_p5 = scmp.lt.s32.totalorder %s2014_s22, 4 }
  0x14   : > { %2949 = sst [smem:[#allocation19_spill]] %s3028_s23  ;;  %p2119_p4 = por %p74_p2, %p49_p0 }
  0x15   : > { %s64_s27 = ssub.s32 %s2006_s20, %s3028_s23  ;;  %s178_s28 = sand.u32 1, %s2014_s22  }
  0x16   : > { %p65_p6 = scmp.eq.s32.totalorder %s64_s27, 0  ;;  %s2918_s29 = sand.u32 1, %s1982_s14  }
  0x17   : > { %s1485_s4 = sshll.u32 %s2918_s29, 8  ;;  %s1506_s5 = sshll.u32 %s2006_s20, 4 }
  0x18   : > { %s2129_s30 = scalar_select %p65_p6, %s1982_s14, %s67_s25  }
  0x19   : > { %s2952_s1 = sld [smem:[#allocation39_spill]]  ;;  %s182_s10 = scalar_lea.vmem [#allocation8], %s1485_s4 }
  0x1a   : > { %2951 = sst [smem:[#allocation20_spill]] %s2129_s30  ;;  %s190_s11 = sshll.u32 %s182_s10, 4  ;;  %s191_s11 = int_to_ptr.vmem [resolvable:$true] %s190_s11 }
  0x1b   : > { %p2141_p7 = pnand %p1563_p5, %p2119_p4  ;;  %p1490_p8 = scmp.ge.s32.totalorder %s2014_s22, 1 }
  0x1c   : > { %s2146_s27 = scalar_lea.sflag [#allocation9], %s178_s28  ;;  %s2016_s4 = smov 512  }
  0x1d   : > { %s2018_s6 = smov 16   ;;  %p217_p9 = scmp.lt.s32.totalorder %s2014_s22, 5 }
  0x1e   : > { %s2157_s7 = sadd.s32 4294967295, %s2014_s22   ;;  %s1479_s28 = sadd.s32 4294967294, %s2014_s22  }
  0x1f   : > { %s187_s8 = scalar_lea.hbm %s2952_s1, %s1506_s5  ;;  %s2017_s5 = smov 256  }
  0x20   : > { %s188_s9 = sshll.u32 %s187_s8, 4  ;;  %p2152_p10 = pnand %p1490_p8, %p217_p9  ;;  %s189_s9 = int_to_ptr.hbm [resolvable:$true] %s188_s9 }
  0x21   : > { %1555 = dma.hbm_to_vmem [thread:$0]  (!%p2141_p7), %s189_s9, 4096, %s191_s11, %s2146_s27, %s2016_s4, %s2017_s5, %s2018_s6  }
  0x22   : > { %s34_s8 = sadd.s32 1, %s2010_s21  ;;  %s41_s10 = sadd.s32 1, %s1994_s17 }
  0x23   : > { %s3030_s8 = smov (!%p2104_p1, %s34_s8), %s2010_s21  ;;  %p48_p11 = scmp.ne.s32.totalorder %s1994_s17, %s1990_s16 }
  0x24   : > { %p54_p12 = scmp.ne.s32.totalorder %s1990_s16, %s1986_s15  ;;  %p36_p13 = scmp.ge.s32.totalorder %s3030_s8, 2 }
  0x25   : > { %p55_p2 = scmp.eq.s32.totalorder %s2157_s7, 0  ;;  %p2172_p4 = por %p49_p0, %p48_p11 }
  0x26   : > { %p130_p6 = scmp.eq.s32.totalorder %s2157_s7, 3  ;;  %s3032_s8 = smov (%p36_p13, %s3030_s8), 0 }
  0x27   : > { %2956 = sst [smem:[#allocation21_spill]] %s3032_s8  ;;  %p2182_p8 = por %p55_p2, %p54_p12 }
  0x28   : > { %p2189_p1 = por %p80_p3, %p55_p2  ;;  %s38_s4 = ssub.s32 %s2010_s21, %s3032_s8 }
  0x29   : > { %p2195_p0 = por %p130_p6, %p48_p11  ;;  %p39_p9 = scmp.eq.s32.totalorder %s38_s4, 0 }
  0x2a   : > { %p136_p13 = scmp.eq.s32.totalorder %s1479_s28, 3  ;;  %s156_s6 = sand.u32 1, %s1994_s17  }
  0x2b   : > { %s2959_s5 = scalar_select %p2195_p0, 1, 0 }
  0x2c   : > { %s1505_s29 = sshll.u32 %s2010_s21, 7  ;;  %p2207_p3 = por %p136_p13, %p54_p12 }
  0x2d   : > { %2960 = sst [smem:[#allocation22_spill]] %s2959_s5  ;;  %s1482_s23 = sshll.u32 %s156_s6, 7 }
  0x2e   : > { %s2202_s1 = scalar_select %p39_p9, %s1994_s17, %s41_s10  }
  0x2f   : > { %s2962_s12 = scalar_select %p2207_p3, 1, 0 }
  0x30   : > { %2961 = sst [smem:[#allocation23_spill]] %s2202_s1  ;;  %s165_s3 = scalar_lea.hbm %s2914_s0, %s1505_s29 }
  0x31   : > { %2963 = sst [smem:[#allocation24_spill]] %s2962_s12  ;;  %s166_s19 = sshll.u32 %s165_s3, 4  ;;  %s167_s19 = int_to_ptr.hbm [resolvable:$true] %s166_s19 }
  0x32   : > { %s160_s5 = scalar_lea.vmem [#allocation5], %s1482_s23  ;;  %p1550_p11 = pnand %p1563_p5, %p2172_p4 }
  0x33   : > { %s168_s28 = sshll.u32 %s160_s5, 4  ;;  %s2964_s10 = sand.u32 1, %s1982_s14   ;;  %s169_s28 = int_to_ptr.vmem [resolvable:$true] %s168_s28 }
  0x34   : > { %s1488_s4 = sshll.u32 %s2964_s10, 1  ;;  %s157_s21 = scalar_lea.sflag [#allocation6], %s156_s6 }
  0x35   : > { %s2019_s1 = smov 128   ;;  %s2020_s17 = smov 8  }
  0x36   : > { %1552 = dma.hbm_to_vmem [thread:$0]  (!%p1550_p11), %s167_s19, 2048, %s169_s28, %s157_s21, %s2019_s1, %s2019_s1, %s2020_s17  }
  0x37   : > { %s1489_s12 = sshll.u32 %s2006_s20, 1  ;;  %s204_s29 = scalar_lea.vmem [#allocation10], %s1488_s4 }
  0x38   : > { %s208_s3 = scalar_lea.hbm %s2916_s2, %s1489_s12  ;;  %s212_s23 = sshll.u32 %s204_s29, 4  ;;  %s213_s23 = int_to_ptr.vmem [resolvable:$true] %s212_s23 }
  0x39   : > { %s210_s8 = sshll.u32 %s208_s3, 4  ;;  %221 = sbr.rel (%p2152_p10) target bundleno = 907 (0x38b), region = 32  ;;  %s211_s8 = int_to_ptr.hbm [resolvable:$true] %s210_s8 }
  0x3a   : > { %1558 = dma.hbm_to_vmem [thread:$0]  (!%p2141_p7), %s211_s8, 32, %s213_s23, %s2146_s27  }
  0x3e   : > { %s2230_s9 = sand.u32 1, %s1990_s16  }
  0x3f   : > { %s1491_s1 = sshll.u32 %s2230_s9, 7  ;;  %s224_s17 = scalar_lea.sflag [#allocation6], %s2230_s9 }
  0x40   : > { %s2234_s15 = scalar_lea.vmem [#allocation5], %s1491_s1 }
  0x41   : > { %1961 = dma.done.wait (%p2182_p8), %s224_s17, 2048  }
  0x42   : > { %1963 = vsyncadd (%p2182_p8), %s224_s17, 4294965248  ;;  %s233_s19 = sand.u32 1, %s2157_s7   ;;  %s235_s21 = sand.u32 1, %s1978_s13  }
  0x43   : > { %s1492_s25 = sshll.u32 %s235_s21, 8  ;;  %s234_s27 = scalar_lea.sflag [#allocation9], %s233_s19 }
  0x44   : > { %s2242_s26 = scalar_lea.vmem [#allocation8], %s1492_s25 }
  0x45   : > { %1965 = dma.done.wait (%p2189_p1), %s234_s27, 4128  }
  0x46   : > { %1967 = vsyncadd (%p2189_p1), %s234_s27, 4294963168  ;;  %s2248_s5 = sshll.u32 %s235_s21, 1  ;;  %s1494_s24 = sshll.u32 %s2230_s9, 9 }
  0x47   : > { %s247_s6 = scalar_lea.vmem [#allocation10], %s2248_s5  ;;  %s2252_s12 = scalar_lea.vmem [#allocation11], %s1494_s24 }
  0x48   : > { %p1495_p5 = scmp.ne.s32.totalorder %s1998_s18, 0 }
  0x4a   : > { %288 = sbr.rel (%p1495_p5) target bundleno = 112 (0x70), region = 48 }
  0x4f   : > { %vm289_vm0 = vcmask 7168   ;;  %v2021_v0 = vmov -inf   ;;  %v2022_v1 = vmov 0.0  }
  0x50   : > { %290 = vst.msk [vmem:[#allocation3] sm:$0xff] %vm289_vm0, %v2021_v0 }
  0x51   : > { %291 = vst.msk [vmem:[#allocation3 + $0x8] sm:$0xff] %vm289_vm0, %v2021_v0 }
  0x52   : > { %292 = vst.msk [vmem:[#allocation3 + $0x10] sm:$0xff] %vm289_vm0, %v2021_v0 }
  0x53   : > { %293 = vst.msk [vmem:[#allocation3 + $0x18] sm:$0xff] %vm289_vm0, %v2021_v0 }
  0x54   : > { %294 = vst.msk [vmem:[#allocation3 + $0x20] sm:$0xff] %vm289_vm0, %v2021_v0 }
  0x55   : > { %295 = vst.msk [vmem:[#allocation3 + $0x28] sm:$0xff] %vm289_vm0, %v2021_v0 }
  0x56   : > { %296 = vst.msk [vmem:[#allocation3 + $0x30] sm:$0xff] %vm289_vm0, %v2021_v0 }
  0x57   : > { %297 = vst.msk [vmem:[#allocation3 + $0x38] sm:$0xff] %vm289_vm0, %v2021_v0 }
  0x58   : > { %298 = vst.msk [vmem:[#allocation3 + $0x40] sm:$0xff] %vm289_vm0, %v2021_v0 }
  0x59   : > { %299 = vst.msk [vmem:[#allocation3 + $0x48] sm:$0xff] %vm289_vm0, %v2021_v0 }
  0x5a   : > { %300 = vst.msk [vmem:[#allocation3 + $0x50] sm:$0xff] %vm289_vm0, %v2021_v0 }
  0x5b   : > { %301 = vst.msk [vmem:[#allocation3 + $0x58] sm:$0xff] %vm289_vm0, %v2021_v0 }
  0x5c   : > { %302 = vst.msk [vmem:[#allocation3 + $0x60] sm:$0xff] %vm289_vm0, %v2021_v0 }
  0x5d   : > { %303 = vst.msk [vmem:[#allocation3 + $0x68] sm:$0xff] %vm289_vm0, %v2021_v0 }
  0x5e   : > { %304 = vst.msk [vmem:[#allocation3 + $0x70] sm:$0xff] %vm289_vm0, %v2021_v0 }
  0x5f   : > { %305 = vst.msk [vmem:[#allocation3 + $0x78] sm:$0xff] %vm289_vm0, %v2021_v0 }
  0x60   : > { %306 = vst.msk [vmem:[#allocation4] sm:$0xff] %vm289_vm0, %v2022_v1 }
  0x61   : > { %307 = vst.msk [vmem:[#allocation4 + $0x8] sm:$0xff] %vm289_vm0, %v2022_v1 }
  0x62   : > { %308 = vst.msk [vmem:[#allocation4 + $0x10] sm:$0xff] %vm289_vm0, %v2022_v1 }
  0x63   : > { %309 = vst.msk [vmem:[#allocation4 + $0x18] sm:$0xff] %vm289_vm0, %v2022_v1 }
  0x64   : > { %310 = vst.msk [vmem:[#allocation4 + $0x20] sm:$0xff] %vm289_vm0, %v2022_v1 }
  0x65   : > { %311 = vst.msk [vmem:[#allocation4 + $0x28] sm:$0xff] %vm289_vm0, %v2022_v1 }
  0x66   : > { %312 = vst.msk [vmem:[#allocation4 + $0x30] sm:$0xff] %vm289_vm0, %v2022_v1 }
  0x67   : > { %313 = vst.msk [vmem:[#allocation4 + $0x38] sm:$0xff] %vm289_vm0, %v2022_v1 }
  0x68   : > { %314 = vst.msk [vmem:[#allocation4 + $0x40] sm:$0xff] %vm289_vm0, %v2022_v1 }
  0x69   : > { %315 = vst.msk [vmem:[#allocation4 + $0x48] sm:$0xff] %vm289_vm0, %v2022_v1 }
  0x6a   : > { %316 = vst.msk [vmem:[#allocation4 + $0x50] sm:$0xff] %vm289_vm0, %v2022_v1 }
  0x6b   : > { %317 = vst.msk [vmem:[#allocation4 + $0x58] sm:$0xff] %vm289_vm0, %v2022_v1 }
  0x6c   : > { %318 = vst.msk [vmem:[#allocation4 + $0x60] sm:$0xff] %vm289_vm0, %v2022_v1 }
  0x6d   : > { %319 = vst.msk [vmem:[#allocation4 + $0x68] sm:$0xff] %vm289_vm0, %v2022_v1 }
  0x6e   : > { %320 = vst.msk [vmem:[#allocation4 + $0x70] sm:$0xff] %vm289_vm0, %v2022_v1 }
  0x6f   : > { %321 = vst.msk [vmem:[#allocation4 + $0x78] sm:$0xff] %vm289_vm0, %v2022_v1 }
  0x70 PF: > { %v368_v2 = vld [vmem:[%s2242_s26 + $0xf0] sm:$0xff]  ;;  %v369_v3 = vld [vmem:[%s2242_s26 + $0xf8] sm:$0xff]  ;;  %v366_v4 = vld [vmem:[%s2242_s26 + $0xe0] sm:$0xff]  ;;  %s1496_s7 = sshll.u32 %s1998_s18, 8  ;;  %vm943_vm1 = vcmask 7168   ;;  %p1498_p7 = scmp.ne.s32.totalorder %s1998_s18, 1 }
  0x71   : > { %376 = vmatpush.msra.mxu0 %v368_v2  ;;  %1509 = vmatpush.msra.mxu2 %v368_v2  ;;  %v367_v5 = vld [vmem:[%s2242_s26 + $0xe8] sm:$0xff]  ;;  %v364_v6 = vld [vmem:[%s2242_s26 + $0xd0] sm:$0xff]  ;;  %v365_v7 = vld [vmem:[%s2242_s26 + $0xd8] sm:$0xff]  ;;  %s507_s11 = sshra.s32 %s1496_s7, 7 }
  0x72   : > { %441 = vmatpush.msra.mxu1 %v369_v3  ;;  %1525 = vmatpush.msra.mxu3 %v369_v3  ;;  %v362_v8 = vld [vmem:[%s2242_s26 + $0xc0] sm:$0xff]  ;;  %v363_v9 = vld [vmem:[%s2242_s26 + $0xc8] sm:$0xff]  ;;  %v360_v10 = vld [vmem:[%s2242_s26 + $0xb0] sm:$0xff]  ;;  %s1497_s28 = sshll.u32 %s507_s11, 3 }
  0x73   : > { %377 = vmatpush.msra.mxu0 %v366_v4  ;;  %1510 = vmatpush.msra.mxu2 %v366_v4  ;;  %v361_v11 = vld [vmem:[%s2242_s26 + $0xb8] sm:$0xff]  ;;  %v358_v12 = vld [vmem:[%s2242_s26 + $0xa0] sm:$0xff]  ;;  %v359_v13 = vld [vmem:[%s2242_s26 + $0xa8] sm:$0xff]  ;;  %s2348_s10 = scalar_lea.vmem [#allocation2], %s1497_s28 }
  0x74   : > { %442 = vmatpush.msra.mxu1 %v367_v5  ;;  %1526 = vmatpush.msra.mxu3 %v367_v5  ;;  %v356_v14 = vld [vmem:[%s2242_s26 + $0x90] sm:$0xff]  ;;  %v357_v15 = vld [vmem:[%s2242_s26 + $0x98] sm:$0xff]  ;;  %v354_v16 = vld [vmem:[%s2242_s26 + $0x80] sm:$0xff] }
  0x75   : > { %378 = vmatpush.msra.mxu0 %v364_v6  ;;  %1511 = vmatpush.msra.mxu2 %v364_v6  ;;  %v355_v17 = vld [vmem:[%s2242_s26 + $0x88] sm:$0xff]  ;;  %v352_v18 = vld [vmem:[%s2242_s26 + $0x70] sm:$0xff]  ;;  %v353_v19 = vld [vmem:[%s2242_s26 + $0x78] sm:$0xff] }
  0x76   : > { %443 = vmatpush.msra.mxu1 %v365_v7  ;;  %1527 = vmatpush.msra.mxu3 %v365_v7  ;;  %v350_v20 = vld [vmem:[%s2242_s26 + $0x60] sm:$0xff]  ;;  %v351_v21 = vld [vmem:[%s2242_s26 + $0x68] sm:$0xff]  ;;  %v348_v22 = vld [vmem:[%s2242_s26 + $0x50] sm:$0xff] }
  0x77   : > { %379 = vmatpush.msra.mxu0 %v362_v8  ;;  %1512 = vmatpush.msra.mxu2 %v362_v8  ;;  %v349_v23 = vld [vmem:[%s2242_s26 + $0x58] sm:$0xff]  ;;  %v346_v24 = vld [vmem:[%s2242_s26 + $0x40] sm:$0xff]  ;;  %v347_v25 = vld [vmem:[%s2242_s26 + $0x48] sm:$0xff] }
  0x78   : > { %444 = vmatpush.msra.mxu1 %v363_v9  ;;  %1528 = vmatpush.msra.mxu3 %v363_v9  ;;  %v344_v26 = vld [vmem:[%s2242_s26 + $0x30] sm:$0xff]  ;;  %v345_v27 = vld [vmem:[%s2242_s26 + $0x38] sm:$0xff]  ;;  %v342_v28 = vld [vmem:[%s2242_s26 + $0x20] sm:$0xff] }
  0x79   : > { %380 = vmatpush.msra.mxu0 %v360_v10  ;;  %1513 = vmatpush.msra.mxu2 %v360_v10  ;;  %v343_v29 = vld [vmem:[%s2242_s26 + $0x28] sm:$0xff]  ;;  %v340_v30 = vld [vmem:[%s2242_s26 + $0x10] sm:$0xff]  ;;  %v341_v31 = vld [vmem:[%s2242_s26 + $0x18] sm:$0xff] }
  0x7a   : > { %445 = vmatpush.msra.mxu1 %v361_v11  ;;  %1529 = vmatpush.msra.mxu3 %v361_v11  ;;  %v338_v32 = vld [vmem:[%s2242_s26] sm:$0xff]  ;;  %v339_v33 = vld [vmem:[%s2242_s26 + $0x8] sm:$0xff]  ;;  %v324_v38 = vld [vmem:[%s2234_s15 + $0x10] sm:$0xff] }
  0x7b   : > { %381 = vmatpush.msra.mxu0 %v358_v12  ;;  %1514 = vmatpush.msra.mxu2 %v358_v12  ;;  %v322_v34 = vld [vmem:[%s2234_s15] sm:$0xff]  ;;  %v323_v36 = vld [vmem:[%s2234_s15 + $0x8] sm:$0xff]  ;;  %v332_v39 = vld [vmem:[%s2234_s15 + $0x50] sm:$0xff] }
  0x7c   : > { %446 = vmatpush.msra.mxu1 %v359_v13  ;;  %1530 = vmatpush.msra.mxu3 %v359_v13  ;;  %v330_v35 = vld [vmem:[%s2234_s15 + $0x40] sm:$0xff]  ;;  %v331_v37 = vld [vmem:[%s2234_s15 + $0x48] sm:$0xff]  ;;  %v325_v40 = vld [vmem:[%s2234_s15 + $0x18] sm:$0xff] }
  0x7d   : > { %382 = vmatpush.msra.mxu0 %v356_v14  ;;  %1515 = vmatpush.msra.mxu2 %v356_v14  ;;  %v333_v41 = vld [vmem:[%s2234_s15 + $0x58] sm:$0xff]  ;;  %v326_v42 = vld [vmem:[%s2234_s15 + $0x20] sm:$0xff]  ;;  %v327_v44 = vld [vmem:[%s2234_s15 + $0x28] sm:$0xff] }
  0x7e   : > { %447 = vmatpush.msra.mxu1 %v357_v15  ;;  %1531 = vmatpush.msra.mxu3 %v357_v15  ;;  %v334_v43 = vld [vmem:[%s2234_s15 + $0x60] sm:$0xff]  ;;  %v335_v45 = vld [vmem:[%s2234_s15 + $0x68] sm:$0xff]  ;;  %v328_v46 = vld [vmem:[%s2234_s15 + $0x30] sm:$0xff] }
  0x7f   : > { %383 = vmatpush.msra.mxu0 %v354_v16  ;;  %1516 = vmatpush.msra.mxu2 %v354_v16  ;;  %v336_v47 = vld [vmem:[%s2234_s15 + $0x70] sm:$0xff]  ;;  %v337_v48 = vld [vmem:[%s2234_s15 + $0x78] sm:$0xff]  ;;  %v370_v50 = vld [vmem:[%s247_s6] sm:$0x3] }
  0x80   : > { %448 = vmatpush.msra.mxu1 %v355_v17  ;;  %1532 = vmatpush.msra.mxu3 %v355_v17  ;;  %v329_v49 = vld [vmem:[%s2234_s15 + $0x38] sm:$0xff]  ;;  %v2338_v51 = vperm.slane %v370_v50, 0  ;;  %v2340_v52 = vperm.slane %v370_v50, 1 }
  0x81   : > { %384 = vmatpush.msra.mxu0 %v352_v18  ;;  %1517 = vmatpush.msra.mxu2 %v352_v18 }
  0x82   : > { %449 = vmatpush.msra.mxu1 %v353_v19  ;;  %1533 = vmatpush.msra.mxu3 %v353_v19 }
  0x83   : > { %385 = vmatpush.msra.mxu0 %v350_v20  ;;  %1518 = vmatpush.msra.mxu2 %v350_v20 }
  0x84   : > { %450 = vmatpush.msra.mxu1 %v351_v21  ;;  %1534 = vmatpush.msra.mxu3 %v351_v21 }
  0x85   : > { %386 = vmatpush.msra.mxu0 %v348_v22  ;;  %1519 = vmatpush.msra.mxu2 %v348_v22 }
  0x86   : > { %451 = vmatpush.msra.mxu1 %v349_v23  ;;  %1535 = vmatpush.msra.mxu3 %v349_v23 }
  0x87   : > { %387 = vmatpush.msra.mxu0 %v346_v24  ;;  %1520 = vmatpush.msra.mxu2 %v346_v24 }
  0x88   : > { %452 = vmatpush.msra.mxu1 %v347_v25  ;;  %1536 = vmatpush.msra.mxu3 %v347_v25 }
  0x89   : > { %388 = vmatpush.msra.mxu0 %v344_v26  ;;  %1521 = vmatpush.msra.mxu2 %v344_v26 }
  0x8a   : > { %453 = vmatpush.msra.mxu1 %v345_v27  ;;  %1537 = vmatpush.msra.mxu3 %v345_v27 }
  0x8b   : > { %389 = vmatpush.msra.mxu0 %v342_v28  ;;  %1522 = vmatpush.msra.mxu2 %v342_v28 }
  0x8c   : > { %454 = vmatpush.msra.mxu1 %v343_v29  ;;  %1538 = vmatpush.msra.mxu3 %v343_v29 }
  0x8d   : > { %390 = vmatpush.msra.mxu0 %v340_v30  ;;  %1523 = vmatpush.msra.mxu2 %v340_v30 }
  0x8e   : > { %455 = vmatpush.msra.mxu1 %v341_v31  ;;  %1539 = vmatpush.msra.mxu3 %v341_v31 }
  0x8f   : > { %391 = vmatpush.msra.mxu0 %v338_v32  ;;  %1524 = vmatpush.msra.mxu2 %v338_v32 }
  0x90   : > { %456 = vmatpush.msra.mxu1 %v339_v33  ;;  %1540 = vmatpush.msra.mxu3 %v339_v33 }
  0x91   : > { %392 = vmatmul.f32.vlgmr.msra.gmra.mxu0 %v322_v34  ;;  %416 = vmatmul.f32.vlgmr.msra.gmra.mxu2 %v330_v35 }
  0x92   : > { %457 = vmatmul.f32.vlgmr.msra.gmra.mxu1 %v322_v34  ;;  %481 = vmatmul.f32.vlgmr.msra.gmra.mxu3 %v330_v35 }
  0x99   : > { %395 = vmatmul.f32.gmra.mxu0 %v323_v36  ;;  %419 = vmatmul.f32.gmra.mxu2 %v331_v37 }
  0x9a   : > { %460 = vmatmul.f32.gmra.mxu1 %v323_v36  ;;  %484 = vmatmul.f32.gmra.mxu3 %v331_v37 }
  0xa1   : > { %398 = vmatmul.f32.gmra.mxu0 %v324_v38  ;;  %422 = vmatmul.f32.gmra.mxu2 %v332_v39 }
  0xa2   : > { %463 = vmatmul.f32.gmra.mxu1 %v324_v38  ;;  %487 = vmatmul.f32.gmra.mxu3 %v332_v39 }
  0xa9   : > { %401 = vmatmul.f32.gmra.mxu0 %v325_v40  ;;  %425 = vmatmul.f32.gmra.mxu2 %v333_v41 }
  0xaa   : > { %466 = vmatmul.f32.gmra.mxu1 %v325_v40  ;;  %490 = vmatmul.f32.gmra.mxu3 %v333_v41 }
  0xb1   : > { %404 = vmatmul.f32.gmra.mxu0 %v326_v42  ;;  %428 = vmatmul.f32.gmra.mxu2 %v334_v43 }
  0xb2   : > { %469 = vmatmul.f32.gmra.mxu1 %v326_v42  ;;  %493 = vmatmul.f32.gmra.mxu3 %v334_v43 }
  0xb9   : > { %407 = vmatmul.f32.gmra.mxu0 %v327_v44  ;;  %431 = vmatmul.f32.gmra.mxu2 %v335_v45 }
  0xba   : > { %472 = vmatmul.f32.gmra.mxu1 %v327_v44  ;;  %496 = vmatmul.f32.gmra.mxu3 %v335_v45 }
  0xc1   : > { %410 = vmatmul.f32.gmra.mxu0 %v328_v46  ;;  %434 = vmatmul.f32.gmra.mxu2 %v336_v47 }
  0xc2   : > { %475 = vmatmul.f32.gmra.mxu1 %v328_v46  ;;  %499 = vmatmul.f32.gmra.mxu3 %v336_v47 }
  0xc9   : > { %437 = vmatmul.f32.gmra.mxu2 %v337_v48  ;;  %413 = vmatmul.f32.gmra.mxu0 %v329_v49 }
  0xca   : > { %502 = vmatmul.f32.gmra.mxu3 %v337_v48  ;;  %478 = vmatmul.f32.gmra.mxu1 %v329_v49 }
 0x10e   : > { %v393_v53 = vpop.f32.mrf.mxu0 }
 0x10f   : > { %v2343_v54 = vadd.f32 %v393_v53, %v2338_v51  ;;  %v458_v55 = vpop.f32.mrf.mxu1 }
 0x110   : > { %v2346_v56 = vadd.f32 %v458_v55, %v2340_v52 }
 0x111   : > { %511 = vst [vmem:[%s2348_s10] sm:$0xff] %v2343_v54 }
 0x112   : > { %512 = vst [vmem:[%s2348_s10 + $0x8] sm:$0xff] %v2346_v56  ;;  %v543_v57 = vmax.f32 %v2343_v54, %v2346_v56 }
 0x114   : > { %544 = vmax.xlane.f32.xlu0 %v543_v57  ;;  %v417_v58 = vpop.f32.mrf.mxu2 }
 0x115   : > { %v2357_v59 = vadd.f32 %v417_v58, %v2338_v51  ;;  %v482_v60 = vpop.f32.mrf.mxu3 }
 0x116   : > { %v2360_v61 = vadd.f32 %v482_v60, %v2340_v52  ;;  %v396_v62 = vpop.f32.mrf.mxu0 }
 0x117   : > { %527 = vst [vmem:[%s2348_s10 + $0x100] sm:$0xff] %v2357_v59  ;;  %v2365_v63 = vadd.f32 %v396_v62, %v2338_v51  ;;  %v461_v0 = vpop.f32.mrf.mxu1 }
 0x118   : > { %528 = vst [vmem:[%s2348_s10 + $0x108] sm:$0xff] %v2360_v61  ;;  %v2370_v1 = vadd.f32 %v461_v0, %v2340_v52  ;;  %v567_v2 = vmax.f32 %v2357_v59, %v2360_v61 }
 0x119   : > { %513 = vst [vmem:[%s2348_s10 + $0x20] sm:$0xff] %v2365_v63 }
 0x11a   : > { %514 = vst [vmem:[%s2348_s10 + $0x28] sm:$0xff] %v2370_v1  ;;  %568 = vmax.xlane.f32.xlu2 %v567_v2  ;;  %v546_v3 = vmax.f32 %v2365_v63, %v2370_v1 }
 0x11c   : > { %547 = vmax.xlane.f32.xlu0 %v546_v3  ;;  %v420_v4 = vpop.f32.mrf.mxu2 }
 0x11d   : > { %v2381_v5 = vadd.f32 %v420_v4, %v2338_v51  ;;  %v485_v6 = vpop.f32.mrf.mxu3 }
 0x11e   : > { %v2384_v7 = vadd.f32 %v485_v6, %v2340_v52  ;;  %v399_v8 = vpop.f32.mrf.mxu0 }
 0x11f   : > { %529 = vst [vmem:[%s2348_s10 + $0x120] sm:$0xff] %v2381_v5  ;;  %v2389_v9 = vadd.f32 %v399_v8, %v2338_v51  ;;  %v464_v10 = vpop.f32.mrf.mxu1 }
 0x120   : > { %530 = vst [vmem:[%s2348_s10 + $0x128] sm:$0xff] %v2384_v7  ;;  %v2394_v11 = vadd.f32 %v464_v10, %v2340_v52  ;;  %v570_v13 = vmax.f32 %v2381_v5, %v2384_v7 }
 0x121   : > { %515 = vst [vmem:[%s2348_s10 + $0x40] sm:$0xff] %v2389_v9 }
 0x122   : > { %516 = vst [vmem:[%s2348_s10 + $0x48] sm:$0xff] %v2394_v11  ;;  %v549_v12 = vmax.f32 %v2389_v9, %v2394_v11 }
 0x124   : > { %550 = vmax.xlane.f32.xlu1 %v549_v12  ;;  %571 = vmax.xlane.f32.xlu0 %v570_v13  ;;  %v423_v14 = vpop.f32.mrf.mxu2 }
 0x125   : > { %v2405_v15 = vadd.f32 %v423_v14, %v2338_v51  ;;  %v488_v16 = vpop.f32.mrf.mxu3 }
 0x126   : > { %v2408_v17 = vadd.f32 %v488_v16, %v2340_v52  ;;  %v402_v18 = vpop.f32.mrf.mxu0 }
 0x127   : > { %531 = vst [vmem:[%s2348_s10 + $0x140] sm:$0xff] %v2405_v15  ;;  %v2413_v19 = vadd.f32 %v402_v18, %v2338_v51  ;;  %v467_v20 = vpop.f32.mrf.mxu1 }
 0x128   : > { %532 = vst [vmem:[%s2348_s10 + $0x148] sm:$0xff] %v2408_v17  ;;  %v2418_v21 = vadd.f32 %v467_v20, %v2340_v52  ;;  %v573_v22 = vmax.f32 %v2405_v15, %v2408_v17  ;;  %v2023_v20 = vmov 0  }
 0x129   : > { %517 = vst [vmem:[%s2348_s10 + $0x60] sm:$0xff] %v2413_v19  ;;  %1664 = vset.pattern.permute.xlu1 %v2023_v20  ;;  %1665 = vset.pattern.permute.xlu2 %v2023_v20 }
 0x12a   : > { %518 = vst [vmem:[%s2348_s10 + $0x68] sm:$0xff] %v2418_v21  ;;  %v552_v32 = vmax.f32 %v2413_v19, %v2418_v21  ;;  %1666 = vset.pattern.permute.xlu0 %v2023_v20 }
 0x12c   : > { %574 = vmax.xlane.f32.xlu1 %v573_v22  ;;  %v426_v23 = vpop.f32.mrf.mxu2  ;;  %v2536_v22 = vld [vmem:[#allocation3] sm:$0xff] }
 0x12d   : > { %v2427_v24 = vadd.f32 %v426_v23, %v2338_v51  ;;  %v491_v25 = vpop.f32.mrf.mxu3 }
 0x12e   : > { %v2430_v26 = vadd.f32 %v491_v25, %v2340_v52  ;;  %v405_v27 = vpop.f32.mrf.mxu0  ;;  %v2546_v25 = vld [vmem:[#allocation3 + $0x40] sm:$0xff] }
 0x12f   : > { %533 = vst [vmem:[%s2348_s10 + $0x160] sm:$0xff] %v2427_v24  ;;  %v2435_v28 = vadd.f32 %v405_v27, %v2338_v51  ;;  %v470_v29 = vpop.f32.mrf.mxu1 }
 0x130   : > { %534 = vst [vmem:[%s2348_s10 + $0x168] sm:$0xff] %v2430_v26  ;;  %v2440_v30 = vadd.f32 %v470_v29, %v2340_v52  ;;  %v576_v31 = vmax.f32 %v2427_v24, %v2430_v26  ;;  %v2548_v29 = vld [vmem:[#allocation3 + $0x8] sm:$0xff] }
 0x131   : > { %519 = vst [vmem:[%s2348_s10 + $0x80] sm:$0xff] %v2435_v28 }
 0x132   : > { %520 = vst [vmem:[%s2348_s10 + $0x88] sm:$0xff] %v2440_v30  ;;  %577 = vmax.xlane.f32.xlu2 %v576_v31  ;;  %v555_v38 = vmax.f32 %v2435_v28, %v2440_v30 }
 0x134   : > { %553 = vmax.xlane.f32.xlu1 %v552_v32  ;;  %v429_v33 = vpop.f32.mrf.mxu2 }
 0x135   : > { %v2451_v34 = vadd.f32 %v429_v33, %v2338_v51  ;;  %v494_v35 = vpop.f32.mrf.mxu3 }
 0x136   : > { %v2454_v36 = vadd.f32 %v494_v35, %v2340_v52  ;;  %v408_v37 = vpop.f32.mrf.mxu0 }
 0x137   : > { %535 = vst [vmem:[%s2348_s10 + $0x180] sm:$0xff] %v2451_v34  ;;  %v2461_v39 = vadd.f32 %v408_v37, %v2338_v51  ;;  %v473_v40 = vpop.f32.mrf.mxu1 }
 0x138   : > { %536 = vst [vmem:[%s2348_s10 + $0x188] sm:$0xff] %v2454_v36  ;;  %v2466_v41 = vadd.f32 %v473_v40, %v2340_v52  ;;  %v579_v42 = vmax.f32 %v2451_v34, %v2454_v36  ;;  %v2568_v40 = vld [vmem:[#allocation3 + $0x48] sm:$0xff] }
 0x139   : > { %521 = vst [vmem:[%s2348_s10 + $0xa0] sm:$0xff] %v2461_v39 }
 0x13a   : > { %522 = vst [vmem:[%s2348_s10 + $0xa8] sm:$0xff] %v2466_v41  ;;  %556 = vmax.xlane.f32.xlu2 %v555_v38  ;;  %580 = vmax.xlane.f32.xlu0 %v579_v42  ;;  %v558_v48 = vmax.f32 %v2461_v39, %v2466_v41  ;;  %v2566_v38 = vld [vmem:[#allocation3 + $0x10] sm:$0xff] }
 0x13c   : > { %v432_v43 = vpop.f32.mrf.mxu2 }
 0x13d   : > { %v2475_v44 = vadd.f32 %v432_v43, %v2338_v51  ;;  %v497_v45 = vpop.f32.mrf.mxu3 }
 0x13e   : > { %v2478_v46 = vadd.f32 %v497_v45, %v2340_v52  ;;  %v411_v47 = vpop.f32.mrf.mxu0 }
 0x13f   : > { %537 = vst [vmem:[%s2348_s10 + $0x1a0] sm:$0xff] %v2475_v44  ;;  %v2485_v49 = vadd.f32 %v411_v47, %v2338_v51  ;;  %v476_v50 = vpop.f32.mrf.mxu1 }
 0x140   : > { %538 = vst [vmem:[%s2348_s10 + $0x1a8] sm:$0xff] %v2478_v46  ;;  %v2490_v53 = vadd.f32 %v476_v50, %v2340_v52  ;;  %v582_v55 = vmax.f32 %v2475_v44, %v2478_v46 }
 0x141   : > { %523 = vst [vmem:[%s2348_s10 + $0xc0] sm:$0xff] %v2485_v49 }
 0x142   : > { %524 = vst [vmem:[%s2348_s10 + $0xc8] sm:$0xff] %v2490_v53  ;;  %559 = vmax.xlane.f32.xlu2 %v558_v48  ;;  %583 = vmax.xlane.f32.xlu1 %v582_v55  ;;  %v561_v57 = vmax.f32 %v2485_v49, %v2490_v53  ;;  %v2585_v55 = vld [vmem:[#allocation3 + $0x50] sm:$0xff] }
 0x144   : > { %562 = vmax.xlane.f32.xlu0 %v561_v57  ;;  %v435_v58 = vpop.f32.mrf.mxu2 }
 0x145   : > { %v2501_v60 = vadd.f32 %v435_v58, %v2338_v51  ;;  %v500_v62 = vpop.f32.mrf.mxu3 }
 0x146   : > { %v2504_v0 = vadd.f32 %v500_v62, %v2340_v52  ;;  %v414_v2 = vpop.f32.mrf.mxu0  ;;  %v2667_v62 = vld [vmem:[#allocation3 + $0x38] sm:$0xff] }
 0x147   : > { %539 = vst [vmem:[%s2348_s10 + $0x1c0] sm:$0xff] %v2501_v60  ;;  %v2509_v3 = vadd.f32 %v414_v2, %v2338_v51  ;;  %v479_v4 = vpop.f32.mrf.mxu1  ;;  %v2596_v2 = vld [vmem:[#allocation3 + $0x58] sm:$0xff] }
 0x148   : > { %540 = vst [vmem:[%s2348_s10 + $0x1c8] sm:$0xff] %v2504_v0  ;;  %v585_v6 = vmax.f32 %v2501_v60, %v2504_v0  ;;  %v2516_v8 = vadd.f32 %v479_v4, %v2340_v52 }
 0x149   : > { %525 = vst [vmem:[%s2348_s10 + $0xe0] sm:$0xff] %v2509_v3 }
 0x14a   : > { %586 = vmax.xlane.f32.xlu2 %v585_v6  ;;  %526 = vst [vmem:[%s2348_s10 + $0xe8] sm:$0xff] %v2516_v8  ;;  %v564_v10 = vmax.f32 %v2509_v3, %v2516_v8  ;;  %v2598_v6 = vld [vmem:[#allocation3 + $0x18] sm:$0xff] }
 0x14b   : > { %2974 = vst [vmem:[#allocation34_spill] sm:$0xff] %v2667_v62 }
 0x14c   : > { %v438_v12 = vpop.f32.mrf.mxu2  ;;  %565 = vmax.xlane.f32.xlu1 %v564_v10 }
 0x14d   : > { %v2525_v13 = vadd.f32 %v438_v12, %v2338_v51  ;;  %v503_v14 = vpop.f32.mrf.mxu3 }
 0x14e   : > { %v2528_v16 = vadd.f32 %v503_v14, %v2340_v52 }
 0x14f   : > { %541 = vst [vmem:[%s2348_s10 + $0x1e0] sm:$0xff] %v2525_v13 }
 0x150   : > { %542 = vst [vmem:[%s2348_s10 + $0x1e8] sm:$0xff] %v2528_v16  ;;  %v588_v18 = vmax.f32 %v2525_v13, %v2528_v16 }
 0x152   : > { %589 = vmax.xlane.f32.xlu0 %v588_v18 }
 0x187   : > { %v545_v51 = vpop.xlane.xlu0 %544 }
 0x188   : > { %v2539_v23 = vmax.f32 %v2536_v22, %v545_v51  ;;  %v2616_v51 = vld [vmem:[#allocation3 + $0x20] sm:$0xff] }
 0x18a   : > { %960 = vst.msk [vmem:[#allocation3] sm:$0xff] %vm943_vm1, %v2539_v23  ;;  %705 = vperm.xlu1 %1664, %v2539_v23  }
 0x18d   : > { %v569_v27 = vpop.xlane.xlu2 %568 }
 0x18e   : > { %v2551_v31 = vmax.f32 %v2546_v25, %v569_v27  ;;  %v2618_v27 = vld [vmem:[#allocation3 + $0x60] sm:$0xff] }
 0x18f   : > { %v548_v32 = vpop.xlane.xlu0 %547  ;;  %2965 = vst [vmem:[#allocation25_spill] sm:$0xff] %v2618_v27 }
 0x190   : > { %968 = vst.msk [vmem:[#allocation3 + $0x40] sm:$0xff] %vm943_vm1, %v2551_v31  ;;  %v2558_v35 = vmax.f32 %v2548_v29, %v548_v32 }
 0x192   : > { %961 = vst.msk [vmem:[#allocation3 + $0x8] sm:$0xff] %vm943_vm1, %v2558_v35  ;;  %745 = vperm.xlu1 %1664, %v2551_v31   ;;  %710 = vperm.xlu2 %1665, %v2558_v35  }
 0x197   : > { %v551_v42 = vpop.xlane.xlu1 %550  ;;  %v572_v43 = vpop.xlane.xlu0 %571 }
 0x198   : > { %v2571_v45 = vmax.f32 %v2566_v38, %v551_v42  ;;  %v2574_v47 = vmax.f32 %v2568_v40, %v572_v43 }
 0x19a   : > { %962 = vst.msk [vmem:[#allocation3 + $0x10] sm:$0xff] %vm943_vm1, %v2571_v45  ;;  %750 = vperm.xlu0 %1666, %v2574_v47  }
 0x19b   : > { %969 = vst.msk [vmem:[#allocation3 + $0x48] sm:$0xff] %vm943_vm1, %v2574_v47 }
 0x19f   : > { %v575_v57 = vpop.xlane.xlu1 %574 }
 0x1a0   : > { %v2588_v58 = vmax.f32 %v2585_v55, %v575_v57 }
 0x1a2   : > { %970 = vst.msk [vmem:[#allocation3 + $0x50] sm:$0xff] %vm943_vm1, %v2588_v58  ;;  %755 = vperm.xlu2 %1665, %v2588_v58   ;;  %715 = vperm.xlu0 %1666, %v2571_v45  }
 0x1a5   : > { %v578_v4 = vpop.xlane.xlu2 %577 }
 0x1a6   : > { %v2601_v10 = vmax.f32 %v2596_v2, %v578_v4  ;;  %v2640_v4 = vld [vmem:[#allocation3 + $0x30] sm:$0xff] }
 0x1a7   : > { %v554_v12 = vpop.xlane.xlu1 %553  ;;  %2969 = vst [vmem:[#allocation29_spill] sm:$0xff] %v2640_v4 }
 0x1a8   : > { %971 = vst.msk [vmem:[#allocation3 + $0x58] sm:$0xff] %vm943_vm1, %v2601_v10  ;;  %v2608_v18 = vmax.f32 %v2598_v6, %v554_v12  ;;  %760 = vperm.xlu1 %1664, %v2601_v10  }
 0x1aa   : > { %963 = vst.msk [vmem:[#allocation3 + $0x18] sm:$0xff] %vm943_vm1, %v2608_v18  ;;  %720 = vperm.xlu2 %1665, %v2608_v18  }
 0x1ad   : > { %v557_v32 = vpop.xlane.xlu2 %556  ;;  %v581_v42 = vpop.xlane.xlu0 %580 }
 0x1ae   : > { %v2621_v43 = vmax.f32 %v2616_v51, %v557_v32  ;;  %v2624_v57 = vmax.f32 %v2618_v27, %v581_v42  ;;  %v2636_v32 = vld [vmem:[#allocation3 + $0x28] sm:$0xff] }
 0x1af   : > { %2967 = vst [vmem:[#allocation27_spill] sm:$0xff] %v2636_v32  ;;  %v2638_v42 = vld [vmem:[#allocation3 + $0x68] sm:$0xff] }
 0x1b0   : > { %2966 = vst [vmem:[#allocation26_spill] sm:$0xff] %v2624_v57  ;;  %725 = vperm.xlu1 %1664, %v2621_v43   ;;  %765 = vperm.xlu0 %1666, %v2624_v57  }
 0x1b1   : > { %964 = vst.msk [vmem:[#allocation3 + $0x20] sm:$0xff] %vm943_vm1, %v2621_v43 }
 0x1b2   : > { %972 = vst.msk [vmem:[#allocation3 + $0x60] sm:$0xff] %vm943_vm1, %v2624_v57 }
 0x1b3   : > { %2968 = vst [vmem:[#allocation28_spill] sm:$0xff] %v2638_v42 }
 0x1b5   : > { %v560_v14 = vpop.xlane.xlu2 %559  ;;  %v584_v48 = vpop.xlane.xlu1 %583 }
 0x1b6   : > { %v2643_v50 = vmax.f32 %v2636_v32, %v560_v14  ;;  %v2646_v12 = vmax.f32 %v2638_v42, %v584_v48  ;;  %v2665_v14 = vld [vmem:[#allocation3 + $0x70] sm:$0xff] }
 0x1b7   : > { %v563_v20 = vpop.xlane.xlu0 %562  ;;  %2973 = vst [vmem:[#allocation33_spill] sm:$0xff] %v2665_v14 }
 0x1b8   : > { %2970 = vst [vmem:[#allocation30_spill] sm:$0xff] %v2643_v50  ;;  %v2655_v52 = vmax.f32 %v2640_v4, %v563_v20  ;;  %730 = vperm.xlu2 %1665, %v2643_v50  }
 0x1b9   : > { %2971 = vst [vmem:[#allocation31_spill] sm:$0xff] %v2646_v12 }
 0x1ba   : > { %965 = vst.msk [vmem:[#allocation3 + $0x28] sm:$0xff] %vm943_vm1, %v2643_v50  ;;  %735 = vperm.xlu1 %1664, %v2655_v52  }
 0x1bb   : > { %2972 = vst [vmem:[#allocation32_spill] sm:$0xff] %v2655_v52 }
 0x1bc   : > { %973 = vst.msk [vmem:[#allocation3 + $0x68] sm:$0xff] %vm943_vm1, %v2646_v12 }
 0x1bd   : > { %966 = vst.msk [vmem:[#allocation3 + $0x30] sm:$0xff] %vm943_vm1, %v2655_v52  ;;  %v587_v33 = vpop.xlane.xlu2 %586 }
 0x1be   : > { %v2670_v20 = vmax.f32 %v2665_v14, %v587_v33  ;;  %v2685_v33 = vld [vmem:[#allocation3 + $0x78] sm:$0xff] }
 0x1bf   : > { %v566_v37 = vpop.xlane.xlu1 %565  ;;  %2977 = vst [vmem:[#allocation37_spill] sm:$0xff] %v2685_v33 }
 0x1c0   : > { %2975 = vst [vmem:[#allocation35_spill] sm:$0xff] %v2670_v20  ;;  %770 = vperm.xlu2 %1665, %v2646_v12   ;;  %v2678_v48 = vmax.f32 %v2667_v62, %v566_v37 }
 0x1c1   : > { %974 = vst.msk [vmem:[#allocation3 + $0x70] sm:$0xff] %vm943_vm1, %v2670_v20 }
 0x1c2   : > { %2976 = vst [vmem:[#allocation36_spill] sm:$0xff] %v2678_v48  ;;  %775 = vperm.xlu1 %1664, %v2670_v20  }
 0x1c3   : > { %967 = vst.msk [vmem:[#allocation3 + $0x38] sm:$0xff] %vm943_vm1, %v2678_v48 }
 0x1c5   : > { %v590_v4 = vpop.xlane.xlu0 %589 }
 0x1c6   : > { %v2688_v42 = vmax.f32 %v2685_v33, %v590_v4 }
 0x1c8   : > { %2978 = vst [vmem:[#allocation38_spill] sm:$0xff] %v2688_v42  ;;  %740 = vperm.xlu2 %1665, %v2678_v48   ;;  %780 = vperm.xlu0 %1666, %v2688_v42  }
 0x1c9   : > { %975 = vst.msk [vmem:[#allocation3 + $0x78] sm:$0xff] %vm943_vm1, %v2688_v42 }
 0x1ec   : > { %v711_v37 = vpop.permute.xlu2 %710 }
 0x1ed   : > { %v785_v52 = vsub.f32 %v2365_v63, %v711_v37  ;;  %v786_v20 = vsub.f32 %v2370_v1, %v711_v37 }
 0x1ef   : > { %v819_v12 = vmul.f32 1.442695, %v785_v52  ;;  %v821_v62 = vmul.f32 1.442695, %v786_v20 }
 0x1f1   : > { %1667 = vpow2.f32 %v819_v12 }
 0x1f2   : > { %1669 = vpow2.f32 %v821_v62 }
 0x1f7   : > { %v1668_v4 = vpop.eup %1667 }
 0x1f8   : > { %v1670_v57 = vpop.eup %1669 }
 0x1f9   : > { %v882_v27 = vadd.f32 %v1670_v57, %v1668_v4 }
 0x1fb   : > { %883 = vadd.xlane.f32.xlu1 %v882_v27 }
 0x1fc   : > { %v706_v14 = vpop.permute.xlu1 %705  ;;  %v756_v33 = vpop.permute.xlu2 %755 }
 0x1fd   : > { %v783_v50 = vsub.f32 %v2343_v54, %v706_v14  ;;  %v784_v48 = vsub.f32 %v2346_v56, %v706_v14  ;;  %v803_v42 = vsub.f32 %v2405_v15, %v756_v33  ;;  %v804_v63 = vsub.f32 %v2408_v17, %v756_v33 }
 0x1ff   : > { %v815_v32 = vmul.f32 1.442695, %v783_v50  ;;  %v817_v1 = vmul.f32 1.442695, %v784_v48  ;;  %v855_v52 = vmul.f32 1.442695, %v803_v42 }
 0x200   : > { %v857_v20 = vmul.f32 1.442695, %v804_v63 }
 0x201   : > { %1671 = vpow2.f32 %v815_v32 }
 0x202   : > { %1673 = vpow2.f32 %v817_v1 }
 0x203   : > { %1675 = vpow2.f32 %v855_v52 }
 0x204   : > { %1677 = vpow2.f32 %v857_v20  ;;  %v746_v62 = vpop.permute.xlu1 %745  ;;  %v721_v27 = vpop.permute.xlu2 %720 }
 0x205   : > { %v799_v57 = vsub.f32 %v2357_v59, %v746_v62  ;;  %v800_v54 = vsub.f32 %v2360_v61, %v746_v62  ;;  %v789_v15 = vsub.f32 %v2413_v19, %v721_v27  ;;  %v790_v50 = vsub.f32 %v2418_v21, %v721_v27 }
 0x207   : > { %v1672_v12 = vpop.eup %1671  ;;  %v847_v56 = vmul.f32 1.442695, %v799_v57  ;;  %v849_v14 = vmul.f32 1.442695, %v800_v54  ;;  %v827_v33 = vmul.f32 1.442695, %v789_v15 }
 0x208   : > { %v1674_v17 = vpop.eup %1673  ;;  %v829_v4 = vmul.f32 1.442695, %v790_v50 }
 0x209   : > { %v1676_v42 = vpop.eup %1675  ;;  %1679 = vpow2.f32 %v847_v56  ;;  %v879_v32 = vadd.f32 %v1674_v17, %v1672_v12 }
 0x20a   : > { %v1678_v48 = vpop.eup %1677  ;;  %1681 = vpow2.f32 %v849_v14 }
 0x20b   : > { %880 = vadd.xlane.f32.xlu2 %v879_v32  ;;  %v909_v37 = vadd.f32 %v1678_v48, %v1676_v42  ;;  %1683 = vpow2.f32 %v827_v33 }
 0x20c   : > { %v751_v59 = vpop.permute.xlu0 %750  ;;  %1685 = vpow2.f32 %v829_v4 }
 0x20d   : > { %910 = vadd.xlane.f32.xlu1 %v909_v37  ;;  %v801_v61 = vsub.f32 %v2381_v5, %v751_v59  ;;  %v802_v63 = vsub.f32 %v2384_v7, %v751_v59 }
 0x20f   : > { %v1680_v1 = vpop.eup %1679  ;;  %v851_v19 = vmul.f32 1.442695, %v801_v61  ;;  %v853_v52 = vmul.f32 1.442695, %v802_v63 }
 0x210   : > { %v1682_v21 = vpop.eup %1681 }
 0x211   : > { %1687 = vpow2.f32 %v851_v19  ;;  %v903_v20 = vadd.f32 %v1682_v21, %v1680_v1  ;;  %v1684_v57 = vpop.eup %1683 }
 0x212   : > { %1689 = vpow2.f32 %v853_v52  ;;  %v731_v62 = vpop.permute.xlu2 %730  ;;  %v1686_v5 = vpop.eup %1685 }
 0x213   : > { %904 = vadd.xlane.f32.xlu2 %v903_v20  ;;  %v888_v17 = vadd.f32 %v1686_v5, %v1684_v57  ;;  %v794_v4 = vsub.f32 %v2466_v41, %v731_v62 }
 0x214   : > { %v716_v27 = vpop.permute.xlu0 %715 }
 0x215   : > { %v787_v54 = vsub.f32 %v2389_v9, %v716_v27  ;;  %v788_v12 = vsub.f32 %v2394_v11, %v716_v27  ;;  %v793_v9 = vsub.f32 %v2461_v39, %v731_v62  ;;  %v837_v19 = vmul.f32 1.442695, %v794_v4 }
 0x217   : > { %v1688_v56 = vpop.eup %1687  ;;  %v823_v7 = vmul.f32 1.442695, %v787_v54  ;;  %v825_v14 = vmul.f32 1.442695, %v788_v12  ;;  %v835_v63 = vmul.f32 1.442695, %v793_v9 }
 0x218   : > { %v1690_v15 = vpop.eup %1689 }
 0x219   : > { %1691 = vpow2.f32 %v823_v7  ;;  %v906_v50 = vadd.f32 %v1690_v15, %v1688_v56 }
 0x21a   : > { %1693 = vpow2.f32 %v825_v14  ;;  %v761_v42 = vpop.permute.xlu1 %760  ;;  %v2710_v32 = vpop.permute.xlu2 %770 }
 0x21b   : > { %v805_v48 = vsub.f32 %v2427_v24, %v761_v42  ;;  %v806_v33 = vsub.f32 %v2430_v26, %v761_v42  ;;  %889 = vadd.xlane.f32.xlu2 %v888_v17  ;;  %907 = vadd.xlane.f32.xlu0 %v906_v50 }
 0x21d   : > { %v859_v11 = vmul.f32 1.442695, %v805_v48  ;;  %v861_v37 = vmul.f32 1.442695, %v806_v33  ;;  %v810_v48 = vsub.f32 %v2478_v46, %v2710_v32 }
 0x21f   : > { %v1692_v59 = vpop.eup %1691  ;;  %1695 = vpow2.f32 %v859_v11 }
 0x220   : > { %v1694_v61 = vpop.eup %1693  ;;  %1697 = vpow2.f32 %v861_v37 }
 0x221   : > { %v885_v1 = vadd.f32 %v1694_v61, %v1692_v59  ;;  %1699 = vpow2.f32 %v835_v63  ;;  %v869_v61 = vmul.f32 1.442695, %v810_v48 }
 0x222   : > { %v726_v52 = vpop.permute.xlu1 %725  ;;  %v741_v21 = vpop.permute.xlu2 %740  ;;  %1701 = vpow2.f32 %v837_v19 }
 0x223   : > { %v791_v24 = vsub.f32 %v2435_v28, %v726_v52  ;;  %v792_v26 = vsub.f32 %v2440_v30, %v726_v52  ;;  %v766_v20 = vpop.permute.xlu0 %765  ;;  %886 = vadd.xlane.f32.xlu0 %v885_v1  ;;  %v797_v54 = vsub.f32 %v2509_v3, %v741_v21  ;;  %v798_v5 = vsub.f32 %v2516_v8, %v741_v21 }
 0x224   : > { %v807_v39 = vsub.f32 %v2451_v34, %v766_v20  ;;  %v808_v27 = vsub.f32 %v2454_v36, %v766_v20  ;;  %v809_v3 = vsub.f32 %v2475_v44, %v2710_v32 }
 0x225   : > { %v1696_v41 = vpop.eup %1695  ;;  %v831_v62 = vmul.f32 1.442695, %v791_v24  ;;  %v833_v57 = vmul.f32 1.442695, %v792_v26  ;;  %v843_v7 = vmul.f32 1.442695, %v797_v54 }
 0x226   : > { %v1698_v12 = vpop.eup %1697  ;;  %v863_v28 = vmul.f32 1.442695, %v807_v39  ;;  %v865_v30 = vmul.f32 1.442695, %v808_v27  ;;  %v845_v34 = vmul.f32 1.442695, %v798_v5 }
 0x227   : > { %1703 = vpow2.f32 %v831_v62  ;;  %v912_v56 = vadd.f32 %v1698_v12, %v1696_v41  ;;  %v1700_v14 = vpop.eup %1699  ;;  %v867_v59 = vmul.f32 1.442695, %v809_v3  ;;  %v2980_v3 = vsub.f32 %v2536_v22, %v2539_v23 }
 0x228   : > { %1705 = vpow2.f32 %v833_v57  ;;  %v1702_v36 = vpop.eup %1701 }
 0x229   : > { %913 = vadd.xlane.f32.xlu2 %v912_v56  ;;  %1707 = vpow2.f32 %v863_v28  ;;  %v894_v11 = vadd.f32 %v1702_v36, %v1700_v14  ;;  %v624_v14 = vld [vmem:[#allocation4 + $0x8] sm:$0xff] }
 0x22a   : > { %1709 = vpow2.f32 %v865_v30 }
 0x22b   : > { %1711 = vpow2.f32 %v843_v7 }
 0x22c   : > { %v736_v15 = vpop.permute.xlu1 %735  ;;  %1713 = vpow2.f32 %v845_v34 }
 0x22d   : > { %v1704_v17 = vpop.eup %1703  ;;  %v795_v8 = vsub.f32 %v2485_v49, %v736_v15  ;;  %v796_v50 = vsub.f32 %v2490_v53, %v736_v15 }
 0x22e   : > { %v1706_v42 = vpop.eup %1705 }
 0x22f   : > { %v839_v33 = vmul.f32 1.442695, %v795_v8  ;;  %v841_v9 = vmul.f32 1.442695, %v796_v50  ;;  %v891_v37 = vadd.f32 %v1706_v42, %v1704_v17  ;;  %v1708_v4 = vpop.eup %1707  ;;  %v655_v8 = vmul.f32 1.442695, %v2980_v3 }
 0x230   : > { %v1710_v44 = vpop.eup %1709  ;;  %v2981_v50 = vsub.f32 %v2585_v55, %v2588_v58 }
 0x231   : > { %1715 = vpow2.f32 %v839_v33  ;;  %895 = vadd.xlane.f32.xlu2 %v894_v11  ;;  %892 = vadd.xlane.f32.xlu1 %v891_v37  ;;  %v1712_v49 = vpop.eup %1711  ;;  %v915_v63 = vadd.f32 %v1710_v44, %v1708_v4  ;;  %v623_v33 = vld [vmem:[#allocation4] sm:$0xff]  ;;  %v633_v11 = vld [vmem:[#allocation4 + $0x50] sm:$0xff]  ;;  %v2984_v44 = vsub.f32 %v2568_v40, %v2574_v47  ;;  %v626_v47 = vld [vmem:[#allocation4 + $0x18] sm:$0xff] }
 0x232   : > { %1717 = vpow2.f32 %v841_v9  ;;  %v1714_v53 = vpop.eup %1713  ;;  %v675_v42 = vmul.f32 1.442695, %v2981_v50  ;;  %v627_v50 = vld [vmem:[#allocation4 + $0x20] sm:$0xff] }
 0x233   : > { %1719 = vpow2.f32 %v867_v59  ;;  %916 = vadd.xlane.f32.xlu0 %v915_v63  ;;  %v900_v24 = vadd.f32 %v1714_v53, %v1712_v49  ;;  %v2983_v59 = vsub.f32 %v2598_v6, %v2608_v18  ;;  %v631_v49 = vld [vmem:[#allocation4 + $0x40] sm:$0xff]  ;;  %v2985_v6 = vsub.f32 %v2566_v38, %v2571_v45  ;;  %v625_v45 = vld [vmem:[#allocation4 + $0x10] sm:$0xff] }
 0x234   : > { %v776_v1 = vpop.permute.xlu1 %775  ;;  %1721 = vpow2.f32 %v869_v61  ;;  %v673_v61 = vmul.f32 1.442695, %v2984_v44 }
 0x235   : > { %v811_v46 = vsub.f32 %v2501_v60, %v776_v1  ;;  %v812_v32 = vsub.f32 %v2504_v0, %v776_v1  ;;  %v661_v55 = vmul.f32 1.442695, %v2983_v59  ;;  %v659_v18 = vmul.f32 1.442695, %v2985_v6 }
 0x237   : > { %v1716_v19 = vpop.eup %1715  ;;  %v871_v52 = vmul.f32 1.442695, %v811_v46  ;;  %v873_v21 = vmul.f32 1.442695, %v812_v32  ;;  %v632_v32 = vld [vmem:[#allocation4 + $0x48] sm:$0xff] }
 0x238   : > { %v1718_v26 = vpop.eup %1717 }
 0x239   : > { %1723 = vpow2.f32 %v871_v52  ;;  %901 = vadd.xlane.f32.xlu1 %v900_v24  ;;  %v897_v20 = vadd.f32 %v1718_v26, %v1716_v19  ;;  %v1720_v27 = vpop.eup %1719  ;;  %v2986_v52 = vsub.f32 %v2596_v2, %v2601_v10 }
 0x23a   : > { %1725 = vpow2.f32 %v873_v21  ;;  %v781_v39 = vpop.permute.xlu0 %780  ;;  %v1722_v57 = vpop.eup %1721 }
 0x23b   : > { %v813_v41 = vsub.f32 %v2525_v13, %v781_v39  ;;  %v814_v62 = vsub.f32 %v2528_v16, %v781_v39  ;;  %898 = vadd.xlane.f32.xlu0 %v897_v20  ;;  %v918_v12 = vadd.f32 %v1722_v57, %v1720_v27  ;;  %v2979_v13 = vsub.f32 %v2548_v29, %v2558_v35  ;;  %v2988_v57 = vld [vmem:[#allocation27_spill] sm:$0xff] }
 0x23c   : > { %v2982_v29 = vsub.f32 %v2546_v25, %v2551_v31  ;;  %v677_v21 = vmul.f32 1.442695, %v2986_v52 }
 0x23d   : > { %v875_v60 = vmul.f32 1.442695, %v813_v41  ;;  %v877_v0 = vmul.f32 1.442695, %v814_v62  ;;  %v657_v16 = vmul.f32 1.442695, %v2979_v13  ;;  %v2987_v41 = vsub.f32 %v2616_v51, %v2621_v43 }
 0x23e   : > { %v671_v35 = vmul.f32 1.442695, %v2982_v29  ;;  %v2998_v29 = vld [vmem:[#allocation32_spill] sm:$0xff] }
 0x23f   : > { %v1724_v54 = vpop.eup %1723  ;;  %1727 = vpow2.f32 %v875_v60  ;;  %v663_v62 = vmul.f32 1.442695, %v2987_v41  ;;  %v2989_v60 = vld [vmem:[#allocation30_spill] sm:$0xff] }
 0x240   : > { %v1726_v5 = vpop.eup %1725  ;;  %1729 = vpow2.f32 %v877_v0  ;;  %v2990_v2 = vsub.f32 %v2988_v57, %v2989_v60  ;;  %v637_v57 = vld [vmem:[#allocation4 + $0x70] sm:$0xff] }
 0x241   : > { %919 = vadd.xlane.f32.xlu1 %v918_v12  ;;  %v921_v28 = vadd.f32 %v1726_v5, %v1724_v54  ;;  %1731 = vpow2.f32 %v657_v16 }
 0x242   : > { %1733 = vpow2.f32 %v655_v8  ;;  %v665_v10 = vmul.f32 1.442695, %v2990_v2  ;;  %v628_v8 = vld [vmem:[#allocation4 + $0x28] sm:$0xff] }
 0x243   : > { %922 = vadd.xlane.f32.xlu2 %v921_v28  ;;  %1735 = vpow2.f32 %v675_v42  ;;  %v634_v28 = vld [vmem:[#allocation4 + $0x58] sm:$0xff]  ;;  %v2997_v42 = vld [vmem:[#allocation29_spill] sm:$0xff] }
 0x244   : > { %1737 = vpow2.f32 %v671_v35  ;;  %v2999_v35 = vsub.f32 %v2997_v42, %v2998_v29 }
 0x245   : > { %v1728_v56 = vpop.eup %1727  ;;  %1739 = vpow2.f32 %v661_v55  ;;  %v3000_v55 = vld [vmem:[#allocation28_spill] sm:$0xff] }
 0x246   : > { %v1730_v30 = vpop.eup %1729  ;;  %1741 = vpow2.f32 %v673_v61 }
 0x247   : > { %v924_v7 = vadd.f32 %v1730_v30, %v1728_v56  ;;  %v1732_v34 = vpop.eup %1731  ;;  %1743 = vpow2.f32 %v659_v18  ;;  %v2991_v56 = vld [vmem:[#allocation25_spill] sm:$0xff]  ;;  %v2992_v30 = vld [vmem:[#allocation26_spill] sm:$0xff]  ;;  %v630_v18 = vld [vmem:[#allocation4 + $0x38] sm:$0xff] }
 0x248   : > { %v688_v36 = vmul.f32 %v1732_v34, %v624_v14  ;;  %v1734_v48 = vpop.eup %1733  ;;  %1745 = vpow2.f32 %v677_v21  ;;  %v2994_v34 = vld [vmem:[#allocation34_spill] sm:$0xff]  ;;  %v2995_v14 = vld [vmem:[#allocation36_spill] sm:$0xff]  ;;  %v3006_v21 = vld [vmem:[#allocation37_spill] sm:$0xff] }
 0x249   : > { %925 = vadd.xlane.f32.xlu0 %v924_v7  ;;  %v1736_v9 = vpop.eup %1735  ;;  %v687_v37 = vmul.f32 %v1734_v48, %v623_v33  ;;  %1747 = vpow2.f32 %v663_v62  ;;  %v2993_v7 = vsub.f32 %v2991_v56, %v2992_v30  ;;  %v667_v48 = vmul.f32 1.442695, %v2999_v35 }
 0x24a   : > { %v697_v4 = vmul.f32 %v1736_v9, %v633_v11  ;;  %v1738_v31 = vpop.eup %1737  ;;  %1749 = vpow2.f32 %v665_v10 }
 0x24b   : > { %v695_v63 = vmul.f32 %v1738_v31, %v631_v49  ;;  %v1740_v40 = vpop.eup %1739  ;;  %v679_v13 = vmul.f32 1.442695, %v2993_v7  ;;  %v3003_v49 = vld [vmem:[#allocation33_spill] sm:$0xff] }
 0x24c   : > { %v1742_v46 = vpop.eup %1741  ;;  %v690_v19 = vmul.f32 %v1740_v40, %v626_v47 }
 0x24d   : > { %v696_v26 = vmul.f32 %v1742_v46, %v632_v32  ;;  %v1744_v38 = vpop.eup %1743  ;;  %1751 = vpow2.f32 %v679_v13 }
 0x24e   : > { %v689_v0 = vmul.f32 %v1744_v38, %v625_v45  ;;  %v1746_v12 = vpop.eup %1745  ;;  %v636_v45 = vld [vmem:[#allocation4 + $0x68] sm:$0xff] }
 0x24f   : > { %v698_v16 = vmul.f32 %v1746_v12, %v634_v28  ;;  %v638_v28 = vld [vmem:[#allocation4 + $0x78] sm:$0xff] }
 0x26e   : > { %v884_v15 = vpop.xlane.xlu1 %883 }
 0x26f   : > { %v928_v17 = vadd.f32 %v884_v15, %v688_v36  ;;  %v2996_v36 = vsub.f32 %v2994_v34, %v2995_v14 }
 0x271   : > { %945 = vst.msk [vmem:[#allocation4 + $0x8] sm:$0xff] %vm943_vm1, %v928_v17  ;;  %v669_v15 = vmul.f32 1.442695, %v2996_v36  ;;  %v1748_v17 = vpop.eup %1747 }
 0x272   : > { %v1750_v3 = vpop.eup %1749  ;;  %v691_v9 = vmul.f32 %v1748_v17, %v627_v50 }
 0x273   : > { %1753 = vpow2.f32 %v669_v15  ;;  %v692_v33 = vmul.f32 %v1750_v3, %v628_v8  ;;  %v1752_v11 = vpop.eup %1751 }
 0x274   : > { %1755 = vpow2.f32 %v667_v48 }
 0x279   : > { %v1754_v31 = vpop.eup %1753 }
 0x27a   : > { %v694_v47 = vmul.f32 %v1754_v31, %v630_v18  ;;  %v1756_v46 = vpop.eup %1755 }
 0x27e   : > { %v881_v22 = vpop.xlane.xlu2 %880 }
 0x27f   : > { %v927_v23 = vadd.f32 %v881_v22, %v687_v37 }
 0x280   : > { %v911_v58 = vpop.xlane.xlu1 %910 }
 0x281   : > { %944 = vst.msk [vmem:[#allocation4] sm:$0xff] %vm943_vm1, %v927_v23  ;;  %v937_v25 = vadd.f32 %v911_v58, %v697_v4  ;;  %v635_v23 = vld [vmem:[#allocation4 + $0x60] sm:$0xff]  ;;  %v3001_v58 = vld [vmem:[#allocation31_spill] sm:$0xff] }
 0x282   : > { %v3002_v44 = vsub.f32 %v3000_v55, %v3001_v58 }
 0x283   : > { %954 = vst.msk [vmem:[#allocation4 + $0x50] sm:$0xff] %vm943_vm1, %v937_v25  ;;  %v699_v25 = vmul.f32 %v1752_v11, %v635_v23 }
 0x284   : > { %v681_v61 = vmul.f32 1.442695, %v3002_v44 }
 0x286   : > { %v905_v53 = vpop.xlane.xlu2 %904  ;;  %1757 = vpow2.f32 %v681_v61 }
 0x287   : > { %v935_v1 = vadd.f32 %v905_v53, %v695_v63  ;;  %v3004_v63 = vld [vmem:[#allocation35_spill] sm:$0xff] }
 0x288   : > { %v3005_v53 = vsub.f32 %v3003_v49, %v3004_v63 }
 0x289   : > { %952 = vst.msk [vmem:[#allocation4 + $0x40] sm:$0xff] %vm943_vm1, %v935_v1 }
 0x28a   : > { %v683_v1 = vmul.f32 1.442695, %v3005_v53 }
 0x28c   : > { %1759 = vpow2.f32 %v683_v1 }
 0x28e   : > { %v890_v24 = vpop.xlane.xlu2 %889  ;;  %v908_v39 = vpop.xlane.xlu0 %907 }
 0x28f   : > { %v930_v20 = vadd.f32 %v890_v24, %v690_v19  ;;  %v936_v27 = vadd.f32 %v908_v39, %v696_v26  ;;  %v629_v19 = vld [vmem:[#allocation4 + $0x30] sm:$0xff] }
 0x290   : > { %v3007_v24 = vld [vmem:[#allocation38_spill] sm:$0xff]  ;;  %v693_v39 = vmul.f32 %v1756_v46, %v629_v19 }
 0x291   : > { %947 = vst.msk [vmem:[#allocation4 + $0x18] sm:$0xff] %vm943_vm1, %v930_v20  ;;  %v3008_v26 = vsub.f32 %v3006_v21, %v3007_v24 }
 0x292   : > { %953 = vst.msk [vmem:[#allocation4 + $0x48] sm:$0xff] %vm943_vm1, %v936_v27  ;;  %v1758_v27 = vpop.eup %1757 }
 0x293   : > { %v685_v20 = vmul.f32 1.442695, %v3008_v26  ;;  %v1760_v62 = vpop.eup %1759  ;;  %v700_v60 = vmul.f32 %v1758_v27, %v636_v45 }
 0x295   : > { %1761 = vpow2.f32 %v685_v20 }
 0x296   : > { %v887_v54 = vpop.xlane.xlu0 %886 }
 0x297   : > { %v929_v5 = vadd.f32 %v887_v54, %v689_v0  ;;  %v701_v0 = vmul.f32 %v1760_v62, %v637_v57 }
 0x299   : > { %946 = vst.msk [vmem:[#allocation4 + $0x10] sm:$0xff] %vm943_vm1, %v929_v5 }
 0x29b   : > { %v1762_v5 = vpop.eup %1761 }
 0x29c   : > { %v914_v51 = vpop.xlane.xlu2 %913  ;;  %v702_v56 = vmul.f32 %v1762_v5, %v638_v28 }
 0x29d   : > { %v938_v43 = vadd.f32 %v914_v51, %v698_v16 }
 0x29f   : > { %955 = vst.msk [vmem:[#allocation4 + $0x58] sm:$0xff] %vm943_vm1, %v938_v43 }
 0x2a4   : > { %v896_v37 = vpop.xlane.xlu2 %895  ;;  %v893_v22 = vpop.xlane.xlu1 %892 }
 0x2a5   : > { %v932_v4 = vadd.f32 %v896_v37, %v692_v33  ;;  %v931_v59 = vadd.f32 %v893_v22, %v691_v9 }
 0x2a6   : > { %v917_v6 = vpop.xlane.xlu0 %916 }
 0x2a7   : > { %949 = vst.msk [vmem:[#allocation4 + $0x28] sm:$0xff] %vm943_vm1, %v932_v4  ;;  %v939_v40 = vadd.f32 %v917_v6, %v699_v25 }
 0x2a8   : > { %948 = vst.msk [vmem:[#allocation4 + $0x20] sm:$0xff] %vm943_vm1, %v931_v59 }
 0x2a9   : > { %956 = vst.msk [vmem:[#allocation4 + $0x60] sm:$0xff] %vm943_vm1, %v939_v40 }
 0x2ac   : > { %v902_v32 = vpop.xlane.xlu1 %901 }
 0x2ad   : > { %v934_v52 = vadd.f32 %v902_v32, %v694_v47 }
 0x2ae   : > { %v899_v38 = vpop.xlane.xlu0 %898 }
 0x2af   : > { %951 = vst.msk [vmem:[#allocation4 + $0x38] sm:$0xff] %vm943_vm1, %v934_v52  ;;  %v933_v41 = vadd.f32 %v899_v38, %v693_v39 }
 0x2b1   : > { %950 = vst.msk [vmem:[#allocation4 + $0x30] sm:$0xff] %vm943_vm1, %v933_v41 }
 0x2b4   : > { %v920_v2 = vpop.xlane.xlu1 %919 }
 0x2b5   : > { %v940_v10 = vadd.f32 %v920_v2, %v700_v60 }
 0x2b6   : > { %v923_v54 = vpop.xlane.xlu2 %922 }
 0x2b7   : > { %957 = vst.msk [vmem:[#allocation4 + $0x68] sm:$0xff] %vm943_vm1, %v940_v10  ;;  %v941_v12 = vadd.f32 %v923_v54, %v701_v0 }
 0x2b9   : > { %958 = vst.msk [vmem:[#allocation4 + $0x70] sm:$0xff] %vm943_vm1, %v941_v12 }
 0x2bb   : > { %979 = sbr.rel (%p1498_p7) target bundleno = 885 (0x375), region = 52 }
 0x2bc   : > { %v926_v30 = vpop.xlane.xlu0 %925 }
 0x2bd   : > { %v942_v7 = vadd.f32 %v926_v30, %v702_v56 }
 0x2bf   : > { %959 = vst.msk [vmem:[#allocation4 + $0x78] sm:$0xff] %vm943_vm1, %v942_v7 }
 0x2c0   : > { %v1000_v13 = vld [vmem:[#allocation4 + $0x20] sm:$0xff]  ;;  %v2024_v16 = vmov 0   ;;  %v998_v51 = vld [vmem:[#allocation4 + $0x10] sm:$0xff]  ;;  %v1001_v34 = vld [vmem:[#allocation4 + $0x28] sm:$0xff] }
 0x2c1   : > { %1765 = vset.pattern.permute.xlu2 %v2024_v16  ;;  %1764 = vset.pattern.permute.xlu1 %v2024_v16  ;;  %1766 = vlog2.f32 %v1000_v13  ;;  %v996_v43 = vld [vmem:[#allocation4] sm:$0xff]  ;;  %v999_v14 = vld [vmem:[#allocation4 + $0x18] sm:$0xff]  ;;  %v997_v36 = vld [vmem:[#allocation4 + $0x8] sm:$0xff] }
 0x2c2   : > { %1763 = vset.pattern.permute.xlu0 %v2024_v16  ;;  %1768 = vlog2.f32 %v998_v51  ;;  %v984_v17 = vld [vmem:[#allocation3 + $0x20] sm:$0xff]  ;;  %v982_v50 = vld [vmem:[#allocation3 + $0x10] sm:$0xff]  ;;  %v1003_v33 = vld [vmem:[#allocation4 + $0x38] sm:$0xff] }
 0x2c3   : > { %1770 = vlog2.f32 %v996_v43  ;;  %v1004_v42 = vld [vmem:[#allocation4 + $0x40] sm:$0xff]  ;;  %v1002_v22 = vld [vmem:[#allocation4 + $0x30] sm:$0xff]  ;;  %v985_v44 = vld [vmem:[#allocation3 + $0x28] sm:$0xff] }
 0x2c4   : > { %1772 = vlog2.f32 %v1001_v34  ;;  %v980_v48 = vld [vmem:[#allocation3] sm:$0xff]  ;;  %v983_v25 = vld [vmem:[#allocation3 + $0x18] sm:$0xff]  ;;  %v981_v49 = vld [vmem:[#allocation3 + $0x8] sm:$0xff] }
 0x2c5   : > { %1774 = vlog2.f32 %v999_v14  ;;  %v1007_v53 = vld [vmem:[#allocation4 + $0x58] sm:$0xff]  ;;  %v1006_v18 = vld [vmem:[#allocation4 + $0x50] sm:$0xff]  ;;  %v1005_v46 = vld [vmem:[#allocation4 + $0x48] sm:$0xff] }
 0x2c6   : > { %1776 = vlog2.f32 %v997_v36  ;;  %v988_v52 = vld [vmem:[#allocation3 + $0x40] sm:$0xff]  ;;  %v987_v24 = vld [vmem:[#allocation3 + $0x38] sm:$0xff]  ;;  %v986_v20 = vld [vmem:[#allocation3 + $0x30] sm:$0xff] }
 0x2c7   : > { %v1767_v15 = vpop.eup %1766  ;;  %1778 = vlog2.f32 %v1004_v42  ;;  %v1010_v27 = vld [vmem:[#allocation4 + $0x70] sm:$0xff]  ;;  %v1009_v41 = vld [vmem:[#allocation4 + $0x68] sm:$0xff]  ;;  %v1008_v60 = vld [vmem:[#allocation4 + $0x60] sm:$0xff] }
 0x2c8   : > { %v1769_v3 = vpop.eup %1768  ;;  %v1021_v8 = vmul.f32 0.6931472, %v1767_v15  ;;  %1780 = vlog2.f32 %v1003_v33  ;;  %v991_v0 = vld [vmem:[#allocation3 + $0x58] sm:$0xff]  ;;  %v990_v12 = vld [vmem:[#allocation3 + $0x50] sm:$0xff]  ;;  %v989_v28 = vld [vmem:[#allocation3 + $0x48] sm:$0xff] }
 0x2c9   : > { %v1771_v29 = vpop.eup %1770  ;;  %v1017_v35 = vmul.f32 0.6931472, %v1769_v3  ;;  %1782 = vlog2.f32 %v1002_v22  ;;  %v1011_v51 = vld [vmem:[#allocation4 + $0x78] sm:$0xff]  ;;  %v994_v14 = vld [vmem:[#allocation3 + $0x70] sm:$0xff]  ;;  %v993_v15 = vld [vmem:[#allocation3 + $0x68] sm:$0xff] }
 0x2ca   : > { %v1773_v9 = vpop.eup %1772  ;;  %v1048_v11 = vadd.f32 %v1021_v8, %v984_v17  ;;  %v1013_v37 = vmul.f32 0.6931472, %v1771_v29  ;;  %1784 = vlog2.f32 %v1007_v53  ;;  %v992_v3 = vld [vmem:[#allocation3 + $0x60] sm:$0xff]  ;;  %v1079_v22 = vld [vmem:[#allocation2 + $0x98] sm:$0xff] }
 0x2cb   : > { %v1775_v23 = vpop.eup %1774  ;;  %v1046_v4 = vadd.f32 %v1017_v35, %v982_v50  ;;  %v1023_v58 = vmul.f32 0.6931472, %v1773_v9  ;;  %1786 = vlog2.f32 %v1006_v18  ;;  %v1076_v9 = vld [vmem:[#allocation2 + $0x80] sm:$0xff] }
 0x2cc   : > { %v1777_v59 = vpop.eup %1776  ;;  %1146 = vperm.xlu2 %1765, %v1048_v11   ;;  %v1044_v55 = vadd.f32 %v1013_v37, %v980_v48  ;;  %v1019_v61 = vmul.f32 0.6931472, %v1775_v23  ;;  %1788 = vlog2.f32 %v1005_v46  ;;  %v995_v48 = vld [vmem:[#allocation3 + $0x78] sm:$0xff]  ;;  %v1077_v11 = vld [vmem:[#allocation2 + $0x88] sm:$0xff]  ;;  %v1078_v37 = vld [vmem:[#allocation2 + $0x90] sm:$0xff] }
 0x2cd   : > { %1136 = vperm.xlu1 %1764, %v1046_v4   ;;  %v1015_v31 = vmul.f32 0.6931472, %v1777_v59  ;;  %v1049_v63 = vadd.f32 %v1023_v58, %v985_v44  ;;  %v1779_v1 = vpop.eup %1778  ;;  %1790 = vlog2.f32 %v1010_v27  ;;  %v1080_v44 = vld [vmem:[#allocation2 + $0xa0] sm:$0xff]  ;;  %v1095_v46 = vld [vmem:[#allocation2 + $0x118] sm:$0xff] }
 0x2ce   : > { %1126 = vperm.xlu0 %1763, %v1044_v55   ;;  %v1047_v6 = vadd.f32 %v1019_v61, %v983_v25  ;;  %v1781_v40 = vpop.eup %1780  ;;  %v1029_v19 = vmul.f32 0.6931472, %v1779_v1  ;;  %1792 = vlog2.f32 %v1009_v41  ;;  %v1081_v61 = vld [vmem:[#allocation2 + $0xa8] sm:$0xff]  ;;  %v1082_v25 = vld [vmem:[#allocation2 + $0xb0] sm:$0xff]  ;;  %v1092_v18 = vld [vmem:[#allocation2 + $0x100] sm:$0xff] }
 0x2cf   : > { %v1045_v47 = vadd.f32 %v1015_v31, %v981_v49  ;;  %v1783_v32 = vpop.eup %1782  ;;  %v1027_v21 = vmul.f32 0.6931472, %v1781_v40  ;;  %1794 = vlog2.f32 %v1008_v60  ;;  %v1083_v31 = vld [vmem:[#allocation2 + $0xb8] sm:$0xff]  ;;  %v1093_v40 = vld [vmem:[#allocation2 + $0x108] sm:$0xff] }
 0x2d0   : > { %v1025_v26 = vmul.f32 0.6931472, %v1783_v32  ;;  %v1052_v39 = vadd.f32 %v1029_v19, %v988_v52  ;;  %v1785_v38 = vpop.eup %1784  ;;  %1796 = vlog2.f32 %v1011_v51  ;;  %v1107_v27 = vld [vmem:[#allocation2 + $0x178] sm:$0xff]  ;;  %v1069_v60 = vld [vmem:[#allocation2 + $0x48] sm:$0xff] }
 0x2d1   : > { %v1051_v45 = vadd.f32 %v1027_v21, %v987_v24  ;;  %v1787_v62 = vpop.eup %1786  ;;  %v1035_v10 = vmul.f32 0.6931472, %v1785_v38  ;;  %v1063_v51 = vld [vmem:[#allocation2 + $0x18] sm:$0xff] }
 0x2d2   : > { %v1050_v57 = vadd.f32 %v1025_v26, %v986_v20  ;;  %v1789_v2 = vpop.eup %1788  ;;  %v1033_v54 = vmul.f32 0.6931472, %v1787_v62  ;;  %v1104_v26 = vld [vmem:[#allocation2 + $0x160] sm:$0xff]  ;;  %v1105_v20 = vld [vmem:[#allocation2 + $0x168] sm:$0xff] }
 0x2d3   : > { %v1031_v5 = vmul.f32 0.6931472, %v1789_v2  ;;  %v1055_v56 = vadd.f32 %v1035_v10, %v991_v0  ;;  %v1791_v30 = vpop.eup %1790  ;;  %v1070_v0 = vld [vmem:[#allocation2 + $0x50] sm:$0xff] }
 0x2d4   : > { %1151 = vperm.xlu2 %1765, %v1049_v63   ;;  %v1054_v7 = vadd.f32 %v1033_v54, %v990_v12  ;;  %v1793_v13 = vpop.eup %1792  ;;  %v1041_v34 = vmul.f32 0.6931472, %v1791_v30  ;;  %v1071_v12 = vld [vmem:[#allocation2 + $0x58] sm:$0xff] }
 0x2d5   : > { %1141 = vperm.xlu1 %1764, %v1047_v6   ;;  %v1053_v16 = vadd.f32 %v1031_v5, %v989_v28  ;;  %v1795_v43 = vpop.eup %1794  ;;  %v1039_v36 = vmul.f32 0.6931472, %v1793_v13 }
 0x2d6   : > { %1131 = vperm.xlu0 %1763, %v1045_v47   ;;  %v1037_v17 = vmul.f32 0.6931472, %v1795_v43  ;;  %v1058_v8 = vadd.f32 %v1041_v34, %v994_v14  ;;  %v1797_v29 = vpop.eup %1796  ;;  %v1094_v47 = vld [vmem:[#allocation2 + $0x110] sm:$0xff]  ;;  %v1116_v14 = vld [vmem:[#allocation2 + $0x1c0] sm:$0xff] }
 0x2d7   : > { %v1057_v50 = vadd.f32 %v1039_v36, %v993_v15  ;;  %v1043_v35 = vmul.f32 0.6931472, %v1797_v29  ;;  %v1119_v29 = vld [vmem:[#allocation2 + $0x1d8] sm:$0xff] }
 0x2d8   : > { %v1056_v42 = vadd.f32 %v1037_v17, %v992_v3  ;;  %v1117_v17 = vld [vmem:[#allocation2 + $0x1c8] sm:$0xff] }
 0x2d9   : > { %v1059_v33 = vadd.f32 %v1043_v35, %v995_v48 }
 0x2dc   : > { %1166 = vperm.xlu2 %1765, %v1052_v39   ;;  %v1106_v39 = vld [vmem:[#allocation2 + $0x170] sm:$0xff] }
 0x2dd   : > { %1161 = vperm.xlu1 %1764, %v1051_v45   ;;  %v1068_v45 = vld [vmem:[#allocation2 + $0x40] sm:$0xff] }
 0x2de   : > { %1156 = vperm.xlu0 %1763, %v1050_v57  }
 0x2e4   : > { %1181 = vperm.xlu2 %1765, %v1055_v56   ;;  %v1060_v56 = vld [vmem:[#allocation2] sm:$0xff] }
 0x2e5   : > { %1176 = vperm.xlu1 %1764, %v1054_v7   ;;  %v1061_v7 = vld [vmem:[#allocation2 + $0x8] sm:$0xff] }
 0x2e6   : > { %1171 = vperm.xlu0 %1763, %v1053_v16   ;;  %v1062_v16 = vld [vmem:[#allocation2 + $0x10] sm:$0xff] }
 0x2ec   : > { %1196 = vperm.xlu2 %1765, %v1058_v8  }
 0x2ed   : > { %1191 = vperm.xlu1 %1764, %v1057_v50   ;;  %v1118_v50 = vld [vmem:[#allocation2 + $0x1d0] sm:$0xff] }
 0x2ee   : > { %1186 = vperm.xlu0 %1763, %v1056_v42  }
 0x2f6   : > { %1201 = vperm.xlu0 %1763, %v1059_v33   ;;  %v1072_v33 = vld [vmem:[#allocation2 + $0x60] sm:$0xff] }
 0x326   : > { %v1147_v23 = vpop.permute.xlu2 %1146 }
 0x327   : > { %v1220_v4 = vsub.f32 %v1076_v9, %v1147_v23  ;;  %v1221_v59 = vsub.f32 %v1077_v11, %v1147_v23  ;;  %v1222_v55 = vsub.f32 %v1078_v37, %v1147_v23  ;;  %v1223_v58 = vsub.f32 %v1079_v22, %v1147_v23  ;;  %v1073_v11 = vld [vmem:[#allocation2 + $0x68] sm:$0xff]  ;;  %v1074_v22 = vld [vmem:[#allocation2 + $0x70] sm:$0xff]  ;;  %v1075_v23 = vld [vmem:[#allocation2 + $0x78] sm:$0xff] }
 0x329   : > { %1284 = vst [vmem:[%s2252_s12 + $0x80] sm:$0xff] %v1220_v4 }
 0x32a   : > { %1285 = vst [vmem:[%s2252_s12 + $0x88] sm:$0xff] %v1221_v59 }
 0x32b   : > { %1286 = vst [vmem:[%s2252_s12 + $0x90] sm:$0xff] %v1222_v55  ;;  %v1064_v55 = vld [vmem:[#allocation2 + $0x20] sm:$0xff] }
 0x32c   : > { %1287 = vst [vmem:[%s2252_s12 + $0x98] sm:$0xff] %v1223_v58 }
 0x32e   : > { %v1152_v49 = vpop.permute.xlu2 %1151 }
 0x32f   : > { %v1224_v63 = vsub.f32 %v1080_v44, %v1152_v49  ;;  %v1225_v53 = vsub.f32 %v1081_v61, %v1152_v49  ;;  %v1226_v1 = vsub.f32 %v1082_v25, %v1152_v49  ;;  %v1227_v6 = vsub.f32 %v1083_v31, %v1152_v49  ;;  %v1065_v44 = vld [vmem:[#allocation2 + $0x28] sm:$0xff]  ;;  %v1066_v31 = vld [vmem:[#allocation2 + $0x30] sm:$0xff] }
 0x331   : > { %1288 = vst [vmem:[%s2252_s12 + $0xa0] sm:$0xff] %v1224_v63  ;;  %v1067_v63 = vld [vmem:[#allocation2 + $0x38] sm:$0xff] }
 0x332   : > { %1289 = vst [vmem:[%s2252_s12 + $0xa8] sm:$0xff] %v1225_v53 }
 0x333   : > { %1290 = vst [vmem:[%s2252_s12 + $0xb0] sm:$0xff] %v1226_v1 }
 0x334   : > { %1291 = vst [vmem:[%s2252_s12 + $0xb8] sm:$0xff] %v1227_v6  ;;  %v1088_v6 = vld [vmem:[#allocation2 + $0xe0] sm:$0xff] }
 0x336   : > { %v1167_v32 = vpop.permute.xlu2 %1166 }
 0x337   : > { %v1236_v19 = vsub.f32 %v1092_v18, %v1167_v32  ;;  %v1237_v52 = vsub.f32 %v1093_v40, %v1167_v32  ;;  %v1238_v21 = vsub.f32 %v1094_v47, %v1167_v32  ;;  %v1239_v24 = vsub.f32 %v1095_v46, %v1167_v32  ;;  %v1089_v40 = vld [vmem:[#allocation2 + $0xe8] sm:$0xff]  ;;  %v1090_v46 = vld [vmem:[#allocation2 + $0xf0] sm:$0xff]  ;;  %v1091_v32 = vld [vmem:[#allocation2 + $0xf8] sm:$0xff] }
 0x339   : > { %1300 = vst [vmem:[%s2252_s12 + $0x100] sm:$0xff] %v1236_v19 }
 0x33a   : > { %1301 = vst [vmem:[%s2252_s12 + $0x108] sm:$0xff] %v1237_v52 }
 0x33b   : > { %1302 = vst [vmem:[%s2252_s12 + $0x110] sm:$0xff] %v1238_v21  ;;  %v1084_v21 = vld [vmem:[#allocation2 + $0xc0] sm:$0xff] }
 0x33c   : > { %1303 = vst [vmem:[%s2252_s12 + $0x118] sm:$0xff] %v1239_v24 }
 0x33e   : > { %v1182_v38 = vpop.permute.xlu2 %1181 }
 0x33f   : > { %v1248_v41 = vsub.f32 %v1104_v26, %v1182_v38  ;;  %v1249_v62 = vsub.f32 %v1105_v20, %v1182_v38  ;;  %v1250_v57 = vsub.f32 %v1106_v39, %v1182_v38  ;;  %v1137_v2 = vpop.permute.xlu1 %1136  ;;  %v1251_v10 = vsub.f32 %v1107_v27, %v1182_v38  ;;  %v1085_v26 = vld [vmem:[#allocation2 + $0xc8] sm:$0xff]  ;;  %v1086_v39 = vld [vmem:[#allocation2 + $0xd0] sm:$0xff] }
 0x340   : > { %v1127_v54 = vpop.permute.xlu0 %1126  ;;  %v1212_v5 = vsub.f32 %v1068_v45, %v1137_v2  ;;  %v1213_v28 = vsub.f32 %v1069_v60, %v1137_v2  ;;  %v1214_v30 = vsub.f32 %v1070_v0, %v1137_v2  ;;  %v1215_v13 = vsub.f32 %v1071_v12, %v1137_v2  ;;  %v1087_v45 = vld [vmem:[#allocation2 + $0xd8] sm:$0xff]  ;;  %v1101_v2 = vld [vmem:[#allocation2 + $0x148] sm:$0xff]  ;;  %v1102_v0 = vld [vmem:[#allocation2 + $0x150] sm:$0xff] }
 0x341   : > { %1312 = vst [vmem:[%s2252_s12 + $0x160] sm:$0xff] %v1248_v41  ;;  %v1204_v43 = vsub.f32 %v1060_v56, %v1127_v54  ;;  %v1205_v34 = vsub.f32 %v1061_v7, %v1127_v54  ;;  %v1206_v15 = vsub.f32 %v1062_v16, %v1127_v54  ;;  %v1207_v8 = vsub.f32 %v1063_v51, %v1127_v54  ;;  %v1103_v54 = vld [vmem:[#allocation2 + $0x158] sm:$0xff] }
 0x342   : > { %1313 = vst [vmem:[%s2252_s12 + $0x168] sm:$0xff] %v1249_v62  ;;  %v1099_v51 = vld [vmem:[#allocation2 + $0x138] sm:$0xff] }
 0x343   : > { %1314 = vst [vmem:[%s2252_s12 + $0x170] sm:$0xff] %v1250_v57  ;;  %v1100_v57 = vld [vmem:[#allocation2 + $0x140] sm:$0xff] }
 0x344   : > { %1315 = vst [vmem:[%s2252_s12 + $0x178] sm:$0xff] %v1251_v10 }
 0x345   : > { %1276 = vst [vmem:[%s2252_s12 + $0x40] sm:$0xff] %v1212_v5 }
 0x346   : > { %1277 = vst [vmem:[%s2252_s12 + $0x48] sm:$0xff] %v1213_v28  ;;  %v1197_v36 = vpop.permute.xlu2 %1196  ;;  %v1096_v28 = vld [vmem:[#allocation2 + $0x120] sm:$0xff] }
 0x347   : > { %1278 = vst [vmem:[%s2252_s12 + $0x50] sm:$0xff] %v1214_v30  ;;  %v1142_v3 = vpop.permute.xlu1 %1141  ;;  %v1260_v35 = vsub.f32 %v1116_v14, %v1197_v36  ;;  %v1261_v48 = vsub.f32 %v1117_v17, %v1197_v36  ;;  %v1262_v9 = vsub.f32 %v1118_v50, %v1197_v36  ;;  %v1263_v37 = vsub.f32 %v1119_v29, %v1197_v36  ;;  %v1097_v30 = vld [vmem:[#allocation2 + $0x128] sm:$0xff]  ;;  %v1112_v14 = vld [vmem:[#allocation2 + $0x1a0] sm:$0xff]  ;;  %v1115_v50 = vld [vmem:[#allocation2 + $0x1b8] sm:$0xff] }
 0x348   : > { %1279 = vst [vmem:[%s2252_s12 + $0x58] sm:$0xff] %v1215_v13  ;;  %v1132_v42 = vpop.permute.xlu0 %1131  ;;  %v1216_v4 = vsub.f32 %v1072_v33, %v1142_v3  ;;  %v1217_v59 = vsub.f32 %v1073_v11, %v1142_v3  ;;  %v1218_v58 = vsub.f32 %v1074_v22, %v1142_v3  ;;  %v1219_v25 = vsub.f32 %v1075_v23, %v1142_v3  ;;  %v1098_v13 = vld [vmem:[#allocation2 + $0x130] sm:$0xff]  ;;  %v1113_v17 = vld [vmem:[#allocation2 + $0x1a8] sm:$0xff] }
 0x349   : > { %1268 = vst [vmem:[%s2252_s12] sm:$0xff] %v1204_v43  ;;  %v1208_v53 = vsub.f32 %v1064_v55, %v1132_v42  ;;  %v1209_v1 = vsub.f32 %v1065_v44, %v1132_v42  ;;  %v1210_v18 = vsub.f32 %v1066_v31, %v1132_v42  ;;  %v1211_v47 = vsub.f32 %v1067_v63, %v1132_v42  ;;  %v1109_v33 = vld [vmem:[#allocation2 + $0x188] sm:$0xff]  ;;  %v1110_v11 = vld [vmem:[#allocation2 + $0x190] sm:$0xff] }
 0x34a   : > { %1269 = vst [vmem:[%s2252_s12 + $0x8] sm:$0xff] %v1205_v34 }
 0x34b   : > { %1270 = vst [vmem:[%s2252_s12 + $0x10] sm:$0xff] %v1206_v15 }
 0x34c   : > { %1271 = vst [vmem:[%s2252_s12 + $0x18] sm:$0xff] %v1207_v8  ;;  %v1114_v8 = vld [vmem:[#allocation2 + $0x1b0] sm:$0xff] }
 0x34d   : > { %1324 = vst [vmem:[%s2252_s12 + $0x1c0] sm:$0xff] %v1260_v35  ;;  %v1108_v35 = vld [vmem:[#allocation2 + $0x180] sm:$0xff] }
 0x34e   : > { %1325 = vst [vmem:[%s2252_s12 + $0x1c8] sm:$0xff] %v1261_v48 }
 0x34f   : > { %1326 = vst [vmem:[%s2252_s12 + $0x1d0] sm:$0xff] %v1262_v9  ;;  %v1162_v61 = vpop.permute.xlu1 %1161 }
 0x350   : > { %1327 = vst [vmem:[%s2252_s12 + $0x1d8] sm:$0xff] %v1263_v37  ;;  %v1157_v49 = vpop.permute.xlu0 %1156  ;;  %v1232_v19 = vsub.f32 %v1088_v6, %v1162_v61  ;;  %v1233_v52 = vsub.f32 %v1089_v40, %v1162_v61  ;;  %v1234_v24 = vsub.f32 %v1090_v46, %v1162_v61  ;;  %v1235_v20 = vsub.f32 %v1091_v32, %v1162_v61  ;;  %v1111_v37 = vld [vmem:[#allocation2 + $0x198] sm:$0xff]  ;;  %v1122_v61 = vld [vmem:[#allocation2 + $0x1f0] sm:$0xff] }
 0x351   : > { %1280 = vst [vmem:[%s2252_s12 + $0x60] sm:$0xff] %v1216_v4  ;;  %v1228_v41 = vsub.f32 %v1084_v21, %v1157_v49  ;;  %v1229_v62 = vsub.f32 %v1085_v26, %v1157_v49  ;;  %v1230_v60 = vsub.f32 %v1086_v39, %v1157_v49  ;;  %v1231_v10 = vsub.f32 %v1087_v45, %v1157_v49  ;;  %v1120_v4 = vld [vmem:[#allocation2 + $0x1e0] sm:$0xff] }
 0x352   : > { %1281 = vst [vmem:[%s2252_s12 + $0x68] sm:$0xff] %v1217_v59 }
 0x353   : > { %1282 = vst [vmem:[%s2252_s12 + $0x70] sm:$0xff] %v1218_v58  ;;  %v1121_v58 = vld [vmem:[#allocation2 + $0x1e8] sm:$0xff] }
 0x354   : > { %1283 = vst [vmem:[%s2252_s12 + $0x78] sm:$0xff] %v1219_v25  ;;  %v1123_v25 = vld [vmem:[#allocation2 + $0x1f8] sm:$0xff] }
 0x355   : > { %1272 = vst [vmem:[%s2252_s12 + $0x20] sm:$0xff] %v1208_v53 }
 0x356   : > { %1273 = vst [vmem:[%s2252_s12 + $0x28] sm:$0xff] %v1209_v1 }
 0x357   : > { %1274 = vst [vmem:[%s2252_s12 + $0x30] sm:$0xff] %v1210_v18  ;;  %v1177_v27 = vpop.permute.xlu1 %1176 }
 0x358   : > { %1275 = vst [vmem:[%s2252_s12 + $0x38] sm:$0xff] %v1211_v47  ;;  %v1172_v38 = vpop.permute.xlu0 %1171  ;;  %v1244_v12 = vsub.f32 %v1100_v57, %v1177_v27  ;;  %v1245_v5 = vsub.f32 %v1101_v2, %v1177_v27  ;;  %v1246_v56 = vsub.f32 %v1102_v0, %v1177_v27  ;;  %v1247_v7 = vsub.f32 %v1103_v54, %v1177_v27 }
 0x359   : > { %1296 = vst [vmem:[%s2252_s12 + $0xe0] sm:$0xff] %v1232_v19  ;;  %v1240_v43 = vsub.f32 %v1096_v28, %v1172_v38  ;;  %v1241_v34 = vsub.f32 %v1097_v30, %v1172_v38  ;;  %v1242_v15 = vsub.f32 %v1098_v13, %v1172_v38  ;;  %v1243_v3 = vsub.f32 %v1099_v51, %v1172_v38 }
 0x35a   : > { %1297 = vst [vmem:[%s2252_s12 + $0xe8] sm:$0xff] %v1233_v52 }
 0x35b   : > { %1298 = vst [vmem:[%s2252_s12 + $0xf0] sm:$0xff] %v1234_v24 }
 0x35c   : > { %1299 = vst [vmem:[%s2252_s12 + $0xf8] sm:$0xff] %v1235_v20 }
 0x35d   : > { %1292 = vst [vmem:[%s2252_s12 + $0xc0] sm:$0xff] %v1228_v41 }
 0x35e   : > { %1293 = vst [vmem:[%s2252_s12 + $0xc8] sm:$0xff] %v1229_v62 }
 0x35f   : > { %1294 = vst [vmem:[%s2252_s12 + $0xd0] sm:$0xff] %v1230_v60  ;;  %v1192_v36 = vpop.permute.xlu1 %1191 }
 0x360   : > { %1295 = vst [vmem:[%s2252_s12 + $0xd8] sm:$0xff] %v1231_v10  ;;  %v1187_v16 = vpop.permute.xlu0 %1186  ;;  %v1256_v42 = vsub.f32 %v1112_v14, %v1192_v36  ;;  %v1257_v29 = vsub.f32 %v1113_v17, %v1192_v36  ;;  %v1258_v48 = vsub.f32 %v1114_v8, %v1192_v36  ;;  %v1259_v9 = vsub.f32 %v1115_v50, %v1192_v36 }
 0x361   : > { %1308 = vst [vmem:[%s2252_s12 + $0x140] sm:$0xff] %v1244_v12  ;;  %v1252_v22 = vsub.f32 %v1108_v35, %v1187_v16  ;;  %v1253_v23 = vsub.f32 %v1109_v33, %v1187_v16  ;;  %v1254_v55 = vsub.f32 %v1110_v11, %v1187_v16  ;;  %v1255_v44 = vsub.f32 %v1111_v37, %v1187_v16 }
 0x362   : > { %1309 = vst [vmem:[%s2252_s12 + $0x148] sm:$0xff] %v1245_v5 }
 0x363   : > { %1310 = vst [vmem:[%s2252_s12 + $0x150] sm:$0xff] %v1246_v56 }
 0x364   : > { %1311 = vst [vmem:[%s2252_s12 + $0x158] sm:$0xff] %v1247_v7 }
 0x365   : > { %1304 = vst [vmem:[%s2252_s12 + $0x120] sm:$0xff] %v1240_v43 }
 0x366   : > { %1305 = vst [vmem:[%s2252_s12 + $0x128] sm:$0xff] %v1241_v34 }
 0x367   : > { %1306 = vst [vmem:[%s2252_s12 + $0x130] sm:$0xff] %v1242_v15 }
 0x368   : > { %1307 = vst [vmem:[%s2252_s12 + $0x138] sm:$0xff] %v1243_v3  ;;  %v1202_v59 = vpop.permute.xlu0 %1201 }
 0x369   : > { %1320 = vst [vmem:[%s2252_s12 + $0x1a0] sm:$0xff] %v1256_v42  ;;  %v1264_v31 = vsub.f32 %v1120_v4, %v1202_v59  ;;  %v1265_v49 = vsub.f32 %v1121_v58, %v1202_v59  ;;  %v1266_v63 = vsub.f32 %v1122_v61, %v1202_v59  ;;  %v1267_v53 = vsub.f32 %v1123_v25, %v1202_v59 }
 0x36a   : > { %1321 = vst [vmem:[%s2252_s12 + $0x1a8] sm:$0xff] %v1257_v29 }
 0x36b   : > { %1322 = vst [vmem:[%s2252_s12 + $0x1b0] sm:$0xff] %v1258_v48 }
 0x36c   : > { %1323 = vst [vmem:[%s2252_s12 + $0x1b8] sm:$0xff] %v1259_v9 }
 0x36d   : > { %1316 = vst [vmem:[%s2252_s12 + $0x180] sm:$0xff] %v1252_v22 }
 0x36e   : > { %1317 = vst [vmem:[%s2252_s12 + $0x188] sm:$0xff] %v1253_v23 }
 0x36f   : > { %1318 = vst [vmem:[%s2252_s12 + $0x190] sm:$0xff] %v1254_v55 }
 0x370   : > { %1319 = vst [vmem:[%s2252_s12 + $0x198] sm:$0xff] %v1255_v44 }
 0x371   : > { %1328 = vst [vmem:[%s2252_s12 + $0x1e0] sm:$0xff] %v1264_v31 }
 0x372   : > { %1329 = vst [vmem:[%s2252_s12 + $0x1e8] sm:$0xff] %v1265_v49 }
 0x373   : > { %1330 = vst [vmem:[%s2252_s12 + $0x1f0] sm:$0xff] %v1266_v63 }
 0x374   : > { %1331 = vst [vmem:[%s2252_s12 + $0x1f8] sm:$0xff] %v1267_v53 }
 0x375 PF: > { %s3009_s18 = sld [smem:[#allocation17_spill]]  ;;  %s1346_s1 = sshll.u32 %s2252_s12, 4  ;;  %s1347_s1 = int_to_ptr.vmem [resolvable:$true] %s1346_s1 }
 0x376   : > { %s3011_s23 = sld [smem:[#allocation40_spill]]  ;;  %s1333_s15 = scalar_lea.sflag [#allocation7], %s2230_s9 }
 0x37b   : > { %s1508_s30 = sshll.u32 %s3009_s18, 9 }
 0x37c   : > { %s1345_s8 = scalar_lea.hbm %s3011_s23, %s1508_s30  ;;  %s1908_s26 = scalar_lea.hbm %s3011_s23, 1024 }
 0x37d   : > { %s1348_s17 = sshll.u32 %s1345_s8, 4  ;;  %s1349_s17 = int_to_ptr.hbm [resolvable:$true] %s1348_s17 }
 0x37e   : > { %s1902_s19 = sshra.s32 %s1349_s17, 4  ;;  %s1903_s19 = int_to_ptr.hbm [resolvable:$true] %s1902_s19 }
 0x37f   : > { %s1904_s21 = scalar_lea.hbm %s1903_s19, 512  ;;  %p1909_p4 = scmp.lt.s32.totalorder %s1903_s19, %s3011_s23 }
 0x380   : > { %p1905_p10 = scmp.ne.s32.totalorder %s1903_s19, %s1904_s21  ;;  %p1910_p6 = scmp.lt.s32.totalorder %s1908_s26, %s1904_s21 }
 0x382   : > { %p1906_p12 = pnand %p1905_p10, %p2195_p0  ;;  %p1911_p8 = por %p1910_p6, %p1909_p4 }
 0x384   : > { %p1907_p2 = pneg %p1906_p12 }
 0x386   : > { %p1912_p1 = pnand %p1911_p8, %p1907_p2 }
 0x388   : > { %1915 = shalt.err (!%p1912_p1)
}
 0x389   : > { %s2025_s9 = smov 512   ;;  %s2026_s6 = smov 32  }
 0x38a   : > { %1547 = dma.vmem_to_hbm [thread:$0]  (%p2195_p0), %s1347_s1, 8192, %s1349_s17, %s1333_s15, %s2025_s9, %s2025_s9, %s2026_s6  }
 0x38b PF: > { %s3012_s12 = sld [smem:[#allocation15_spill]]  ;;  %p1564_p9 = scmp.ge.s32.totalorder %s2014_s22, 2 }
 0x38d   : > { %p1560_p13 = pnand %p1564_p9, %p2207_p3 }
 0x38f   : > { %p1561_p11 = pneg %p1560_p13 }
 0x391   : > { %s1363_s11 = sand.u32 1, %s3012_s12  }
 0x392   : > { %s1364_s28 = scalar_lea.sflag [#allocation7], %s1363_s11 }
 0x393   : > { %1969 = dma.done.wait (%p1561_p11), %s1364_s28, 8192  }
 0x394   : > { %1971 = vsyncadd (%p1561_p11), %s1364_s28, 4294959104  ;;  %s22_s22 = sadd.s32 1, %s2014_s22   ;;  %s3014_s10 = sld [smem:[#allocation20_spill]] }
 0x395   : > { %p19_p5 = scmp.ge.s32.totalorder %s22_s22, 6   ;;  %s3015_s18 = sld [smem:[#allocation16_spill]] }
 0x396   : > { %s3016_s17 = sld [smem:[#allocation23_spill]]  ;;  %s3020_s12 = smov %s1978_s13 }
 0x397   : > { %s3017_s19 = sld [smem:[#allocation18_spill]]  ;;  %s3021_s13 = smov %s1982_s14 }
 0x398   : > { %s3018_s4 = sld [smem:[#allocation19_spill]]  ;;  %s3023_s15 = smov %s1990_s16 }
 0x399   : > { %s3019_s21 = sld [smem:[#allocation21_spill]] }
 0x39a   : > { %s3022_s14 = smov %s3014_s10  ;;  %21 = sbr.rel (!%p19_p5) target bundleno = 14 (0xe), region = 110 }
 0x39b   : > { %s3024_s16 = smov %s3015_s18  ;;  %s3025_s18 = smov %s2006_s20 }
 0x39e   : > { %s3026_s20 = smov %s3018_s4 }
 0x39f   :  { %1370 = vsyncpa [#allocation6], 1 }
 0x3a0   :  { %1372 = vsyncpa [#allocation6 + $0x1], 1 }
 0x3a1   :  { %1373 = vsyncpa [#allocation9], 1 }
 0x3a2   :  { %1375 = vsyncpa [#allocation9 + $0x1], 1 }
 0x3a3   :  { %1376 = vsyncpa [#allocation7], 1 }
 0x3a4   :  { %1378 = vsyncpa [#allocation7 + $0x1], 1 }

</bundles_post_ra>
